<compile_context>
chip_gen: v7x
topology: tpu7x:2x2x1
jax: 0.10.0
libtpu: 0.0.40
codegen_flags: <defaults>
</compile_context>

<pallas_src>
import functools

import jax
import jax.numpy as jnp
import numpy as np
from jax import lax
from jax.experimental import pallas as pl
from jax.experimental.pallas import tpu as pltpu

EPS = 1e-5
LANES = 128


# ----------------------------- kernels --------------------------------------

def _stage1_kernel(x_ref, w_ref, b_ref, h_ref, ssum_ref, ssq_ref):
    """conv1 (1x1) as a channel-major matmul; per-block BN1 partial sums."""
    h = jnp.dot(w_ref[...], x_ref[...], preferred_element_type=jnp.float32) + b_ref[...]
    h_ref[...] = h.astype(h_ref.dtype)
    lane0 = lax.broadcasted_iota(jnp.int32, ssum_ref.shape, 1) == 0
    ssum_ref[...] = jnp.where(lane0, jnp.sum(h, axis=1, keepdims=True), 0.0)
    ssq_ref[...] = jnp.where(lane0, jnp.sum(h * h, axis=1, keepdims=True), 0.0)


def _stage2_kernel(W, bpi, halo_lanes,
                   h_ref, halo_ref, a_ref, c_ref, wf_ref, bd_ref,
                   y_ref, ssum_ref, ssq_ref):
    """BN1+ReLU (folded affine) + ConvTranspose2d(3, stride=2, pad=1, out_pad=1).

    Channel-major: pixels on lanes.  The four spatially shifted inputs
    (x[m,n], x[m,n+1], x[m+1,n], x[m+1,n+1]) are built with lane rolls (+ a halo
    row for the image row below the tile), concatenated along sublanes and pushed
    through ONE fused (4C,4C) matmul whose output rows are the parity groups
    [ee|eo|oe|oo].  BN2 partial sums are emitted per block."""
    f32 = jnp.float32
    cmid, tp = h_ref.shape
    a = a_ref[...]
    c = c_ref[...]
    h = jnp.maximum(h_ref[...].astype(f32) * a + c, 0.0)          # (C, tp)
    halo = jnp.maximum(halo_ref[...].astype(f32) * a + c, 0.0)    # (C, halo_lanes)

    # at the bottom image row the "next row" is transposed-conv zero padding
    keep = jnp.where(pl.program_id(1) == bpi - 1, 0.0, 1.0)
    halo = halo * keep
    if halo_lanes < tp:
        halo = jnp.concatenate(
            [halo, jnp.zeros((cmid, tp - halo_lanes), f32)], axis=1)
    halo_pad = pltpu.roll(halo, tp - W, axis=1)    # halo[0:W] -> lanes [tp-W, tp)

    col = lax.broadcasted_iota(jnp.int32, (1, tp), 1)
    wmask = (col % W != W - 1).astype(f32)         # last image column: right pad = 0
    is_tail = col >= tp - W                        # lanes whose x[m+1,.] is the halo

    x00 = h                                                        # x[m,   n]
    x01 = pltpu.roll(h, tp - 1, axis=1) * wmask                    # x[m,   n+1]
    x10 = jnp.where(is_tail, halo_pad, pltpu.roll(h, tp - W, axis=1))  # x[m+1, n]
    x11 = pltpu.roll(x10, tp - 1, axis=1) * wmask                  # x[m+1, n+1]

    xcat = jnp.concatenate([x00, x01, x10, x11], axis=0)           # (4C, tp)
    y = jnp.dot(wf_ref[...], xcat, preferred_element_type=f32) + bd_ref[...]
    y_ref[...] = y.astype(y_ref.dtype)

    lane0 = lax.broadcasted_iota(jnp.int32, ssum_ref.shape, 1) == 0
    ssum_ref[...] = jnp.where(lane0, jnp.sum(y, axis=1, keepdims=True), 0.0)
    ssq_ref[...] = jnp.where(lane0, jnp.sum(y * y, axis=1, keepdims=True), 0.0)


def _stage3_kernel(y_ref, a_ref, c_ref, w_ref, b_ref, z_ref, ssum_ref, ssq_ref):
    """BN2+ReLU + conv3 (1x1) as 4 per-parity channel matmuls against the shared
    (Cout, Cmid) weight (no block-diagonal zero padding); BN3 partial sums."""
    f32 = jnp.float32
    c4, _ = y_ref.shape
    cmid = c4 // 4
    y = jnp.maximum(y_ref[...].astype(f32) * a_ref[...] + c_ref[...], 0.0)
    w = w_ref[...]
    b = b_ref[...]
    parts = []
    for g in range(4):                         # static unroll; sublane-aligned slices
        yg = y[g * cmid:(g + 1) * cmid, :]
        parts.append(jnp.dot(w, yg, preferred_element_type=f32) + b)
    z = jnp.concatenate(parts, axis=0)         # (4*Cout, tp), parity group-major
    z_ref[...] = z.astype(z_ref.dtype)
    lane0 = lax.broadcasted_iota(jnp.int32, ssum_ref.shape, 1) == 0
    ssum_ref[...] = jnp.where(lane0, jnp.sum(z, axis=1, keepdims=True), 0.0)
    ssq_ref[...] = jnp.where(lane0, jnp.sum(z * z, axis=1, keepdims=True), 0.0)


# ----------------------------- wrapper helpers -------------------------------

def _round_up(x, m):
    return -(-x // m) * m


def _affine_from_stats(ssum, ssq, n_pixels, gamma, beta, fold):
    """Fold per-block partial sums into training-mode BN affine (a, c), tiled over
    the `fold` parity groups (group-major along the channel axis).  One-pass
    variance in f32; tiny negatives from cancellation are clamped."""
    C = gamma.size
    s = jnp.sum(ssum, axis=1)
    q = jnp.sum(ssq, axis=1)
    if fold > 1:
        s = s.reshape(fold, C).sum(axis=0)
        q = q.reshape(fold, C).sum(axis=0)
    n = float(n_pixels * fold)
    mean = s / n
    var = jnp.maximum(q / n - mean * mean, 0.0)
    a = gamma.reshape(C) * lax.rsqrt(var + EPS)
    c = beta.reshape(C) - mean * a
    return (jnp.tile(a, fold).reshape(fold * C, 1),
            jnp.tile(c, fold).reshape(fold * C, 1))


def _choose_tp(HW, w_mult, lane_mult, bytes_per_pixel, budget, cap):
    """Largest pixel tile (lane count) dividing HW that is lane_mult-aligned (or the
    whole image), covers whole image rows if w_mult is given, and fits the budget."""
    best = None
    smallest = None
    for tp in range(1, HW + 1):
        if HW % tp:
            continue
        if (tp % lane_mult) and tp != HW:
            continue
        if w_mult and (tp % w_mult):
            continue
        if smallest is None:
            smallest = tp
        if cap is not None and tp > cap:
            continue
        if tp * bytes_per_pixel <= budget:
            best = tp
    return best if best is not None else smallest


def decoder_block_forward(x_nchw, params, *, interm_dtype=jnp.bfloat16,
                          max_tile_pixels=None):
    (w1, b1, g1, bt1, wd, bd, g2, bt2, w3, b3, g3, bt3) = params
    N, Cin, H, W = x_nchw.shape
    Cmid = w1.shape[1]
    Cout = w3.shape[1]
    HW = H * W
    P = N * HW
    f32 = jnp.float32
    isz = jnp.dtype(interm_dtype).itemsize

    # ---- VMEM budget: scoped limit clamped to 48 MiB (safe per-TC on all chips) ----
    try:
        info = pltpu.get_tpu_info()
        vmem_cap = int(getattr(info, "vmem_capacity_bytes", 64 * 1024 * 1024))
    except Exception:
        vmem_cap = 64 * 1024 * 1024
    vmem_limit = int(min(vmem_cap * 3 // 4, 48 * 1024 * 1024))
    budget = vmem_limit // 2

    halo_lanes = min(HW, _round_up(W, LANES))

    # per-stage live bytes per pixel (double-buffered DMA blocks + f32 temps)
    bpp1 = 8 * Cin + 4 * isz * Cmid + 16 * Cmid
    bpp2 = 10 * isz * Cmid + 72 * Cmid
    bpp3 = 8 * isz * Cmid + 8 * isz * Cout + 20 * Cmid + 40 * Cout
    tp1 = _choose_tp(HW, None, LANES, bpp1, budget, max_tile_pixels)
    tp2 = _choose_tp(HW, W, halo_lanes, bpp2, budget, max_tile_pixels)
    tp3 = _choose_tp(HW, None, LANES, bpp3, budget, max_tile_pixels)
    bpi1, bpi2, bpi3 = HW // tp1, HW // tp2, HW // tp3

    def cparams():
        return pltpu.CompilerParams(dimension_semantics=("parallel", "parallel"),
                                    vmem_limit_bytes=vmem_limit)

    # ---- weight prep (tiny, once under jit) ----
    w1t = jnp.transpose(w1).astype(f32)                 # (Cmid, Cin)
    b1c = b1.reshape(Cmid, 1).astype(f32)
    w3t = jnp.transpose(w3).astype(f32)                 # (Cout, Cmid)
    b3c = b3.reshape(Cout, 1).astype(f32)

    # Parity classes (py, px): ee=(0,0), eo=(0,1), oe=(1,0), oo=(1,1)
    #   y[2m,2n]     = W11'x[m,n]
    #   y[2m,2n+1]   = W12'x[m,n] + W10'x[m,n+1]
    #   y[2m+1,2n]   = W21'x[m,n] + W01'x[m+1,n]
    #   y[2m+1,2n+1] = W22'x[m,n] + W20'x[m,n+1] + W02'x[m+1,n] + W00'x[m+1,n+1]
    def tapT(ky, kx):
        return jnp.transpose(wd[ky * 3 + kx])
    Z = jnp.zeros((Cmid, Cmid), f32)
    wf = jnp.concatenate([
        jnp.concatenate([tapT(1, 1), Z,          Z,          Z],          axis=1),
        jnp.concatenate([tapT(1, 2), tapT(1, 0), Z,          Z],          axis=1),
        jnp.concatenate([tapT(2, 1), Z,          tapT(0, 1), Z],          axis=1),
        jnp.concatenate([tapT(2, 2), tapT(2, 0), tapT(0, 2), tapT(0, 0)], axis=1),
    ], axis=0).astype(f32)                               # (4*Cmid, 4*Cmid)
    bdc = jnp.tile(bd.reshape(Cmid), 4).reshape(4 * Cmid, 1).astype(f32)

    x3 = x_nchw.reshape(N, Cin, HW).astype(f32)          # channel-major: no transpose

    def full(shape):
        return pl.BlockSpec(shape, lambda n, t: (0,) * len(shape))

    # ---------------- stage 1: conv1 + BN1 partial stats ----------------
    nblk1 = N * bpi1
    h_pre, s1s, s1q = pl.pallas_call(
        _stage1_kernel,
        grid=(N, bpi1),
        in_specs=[pl.BlockSpec((None, Cin, tp1), lambda n, t: (n, 0, t)),
                  full((Cmid, Cin)), full((Cmid, 1))],
        out_specs=(pl.BlockSpec((None, Cmid, tp1), lambda n, t: (n, 0, t)),
                   pl.BlockSpec((Cmid, LANES), lambda n, t, b=bpi1: (0, n * b + t)),
                   pl.BlockSpec((Cmid, LANES), lambda n, t, b=bpi1: (0, n * b + t))),
        out_shape=(jax.ShapeDtypeStruct((N, Cmid, HW), interm_dtype),
                   jax.ShapeDtypeStruct((Cmid, nblk1 * LANES), f32),
                   jax.ShapeDtypeStruct((Cmid, nblk1 * LANES), f32)),
        compiler_params=cparams(),
        cost_estimate=pl.CostEstimate(flops=2 * P * Cin * Cmid, transcendentals=0,
                                      bytes_accessed=P * Cin * 4 + P * Cmid * isz),
    )(x3, w1t, b1c)

    a1, c1 = _affine_from_stats(s1s, s1q, P, g1, bt1, fold=1)

    # ------- stage 2: BN1+ReLU + deconv2 (parity folded into channels) + BN2 stats -------
    nblk2 = N * bpi2
    r2 = tp2 // halo_lanes
    nlast = HW // halo_lanes - 1
    halo_spec = pl.BlockSpec(
        (None, Cmid, halo_lanes),
        lambda n, t: (n, 0, jnp.minimum((t + 1) * r2, nlast)))
    y_pre, s2s, s2q = pl.pallas_call(
        functools.partial(_stage2_kernel, W, bpi2, halo_lanes),
        grid=(N, bpi2),
        in_specs=[pl.BlockSpec((None, Cmid, tp2), lambda n, t: (n, 0, t)),
                  halo_spec,
                  full((Cmid, 1)), full((Cmid, 1)),
                  full((4 * Cmid, 4 * Cmid)), full((4 * Cmid, 1))],
        out_specs=(pl.BlockSpec((None, 4 * Cmid, tp2), lambda n, t: (n, 0, t)),
                   pl.BlockSpec((4 * Cmid, LANES), lambda n, t, b=bpi2: (0, n * b + t)),
                   pl.BlockSpec((4 * Cmid, LANES), lambda n, t, b=bpi2: (0, n * b + t))),
        out_shape=(jax.ShapeDtypeStruct((N, 4 * Cmid, HW), interm_dtype),
                   jax.ShapeDtypeStruct((4 * Cmid, nblk2 * LANES), f32),
                   jax.ShapeDtypeStruct((4 * Cmid, nblk2 * LANES), f32)),
        compiler_params=cparams(),
        cost_estimate=pl.CostEstimate(flops=2 * P * 16 * Cmid * Cmid, transcendentals=0,
                                      bytes_accessed=P * Cmid * isz + P * 4 * Cmid * isz),
    )(h_pre, h_pre, a1, c1, wf, bdc)

    a2, c2 = _affine_from_stats(s2s, s2q, P, g2, bt2, fold=4)

    # ------- stage 3: BN2+ReLU + conv3 (per-parity dots) + BN3 stats -------
    nblk3 = N * bpi3
    z_pre, s3s, s3q = pl.pallas_call(
        _stage3_kernel,
        grid=(N, bpi3),
        in_specs=[pl.BlockSpec((None, 4 * Cmid, tp3), lambda n, t: (n, 0, t)),
                  full((4 * Cmid, 1)), full((4 * Cmid, 1)),
                  full((Cout, Cmid)), full((Cout, 1))],
        out_specs=(pl.BlockSpec((None, 4 * Cout, tp3), lambda n, t: (n, 0, t)),
                   pl.BlockSpec((4 * Cout, LANES), lambda n, t, b=bpi3: (0, n * b + t)),
                   pl.BlockSpec((4 * Cout, LANES), lambda n, t, b=bpi3: (0, n * b + t))),
        out_shape=(jax.ShapeDtypeStruct((N, 4 * Cout, HW), interm_dtype),
                   jax.ShapeDtypeStruct((4 * Cout, nblk3 * LANES), f32),
                   jax.ShapeDtypeStruct((4 * Cout, nblk3 * LANES), f32)),
        compiler_params=cparams(),
        cost_estimate=pl.CostEstimate(flops=2 * P * 4 * Cmid * Cout, transcendentals=0,
                                      bytes_accessed=P * 4 * Cmid * isz + P * 4 * Cout * isz),
    )(y_pre, a2, c2, w3t, b3c)

    a3, c3 = _affine_from_stats(s3s, s3q, P, g3, bt3, fold=4)

    # ---- epilogue: BN3+ReLU fused by XLA with the parity interleave / NCHW view ----
    z = jnp.maximum(z_pre.astype(f32) * a3.reshape(1, 4 * Cout, 1)
                    + c3.reshape(1, 4 * Cout, 1), 0.0)
    z = z.reshape(N, 2, 2, Cout, H, W)
    z = jnp.transpose(z, (0, 3, 4, 1, 5, 2)).reshape(N, Cout, 2 * H, 2 * W)
    return z


# ----------------------------- pure-JAX reference ----------------------------

def reference_forward(x_nchw, params):
    (w1, b1, g1, bt1, wd, bd, g2, bt2, w3, b3, g3, bt3) = params
    Cmid = w1.shape[1]

    def bn(x, g, b):
        mean = jnp.mean(x, axis=(0, 2, 3), keepdims=True)
        var = jnp.mean((x - mean) ** 2, axis=(0, 2, 3), keepdims=True)
        return (x - mean) / jnp.sqrt(var + EPS) * g.reshape(1, -1, 1, 1) + b.reshape(1, -1, 1, 1)

    h = jnp.einsum('nchw,cd->ndhw', x_nchw, w1) + b1.reshape(1, -1, 1, 1)
    h = jax.nn.relu(bn(h, g1, bt1))

    wd_t = wd.reshape(3, 3, Cmid, Cmid)          # (ky, kx, Cin, Cout)
    w_flip = wd_t[::-1, ::-1, :, :]
    h_nhwc = jnp.transpose(h, (0, 2, 3, 1))
    y = jax.lax.conv_general_dilated(
        h_nhwc, w_flip, window_strides=(1, 1),
        padding=[(1, 2), (1, 2)], lhs_dilation=(2, 2),
        dimension_numbers=('NHWC', 'HWIO', 'NHWC'))
    y = jnp.transpose(y, (0, 3, 1, 2)) + bd.reshape(1, -1, 1, 1)
    y = jax.nn.relu(bn(y, g2, bt2))

    z = jnp.einsum('nchw,cd->ndhw', y, w3) + b3.reshape(1, -1, 1, 1)
    return jax.nn.relu(bn(z, g3, bt3))


if __name__ == "__main__":
    key = jax.random.PRNGKey(0)
    N, Cin, H, W = 2, 32, 16, 16
    n_filters = 16
    Cmid = Cin // 4

    ks = jax.random.split(key, 13)

    def nrm(k, shape, scale=0.2):
        return (scale * jax.random.normal(k, shape)).astype(jnp.float32)

    x = nrm(ks[0], (N, Cin, H, W), 1.0)
    # conv1: W1[ci, co] (== PyTorch weight[co, ci, 0, 0])
    w1 = nrm(ks[1], (Cin, Cmid))
    b1 = nrm(ks[2], (1, Cmid), 0.05)
    g1 = 1.0 + nrm(ks[3], (1, Cmid), 0.1)
    bt1 = nrm(ks[4], (1, Cmid), 0.1)
    # deconv2: taps flattened as (ky*3+kx, Cin, Cout) (== PyTorch weight[ci, co, ky, kx])
    wd = nrm(ks[5], (9, Cmid, Cmid))
    bd = nrm(ks[6], (1, Cmid), 0.05)
    g2 = 1.0 + nrm(ks[7], (1, Cmid), 0.1)
    bt2 = nrm(ks[8], (1, Cmid), 0.1)
    # conv3: W3[ci, co]
    w3 = nrm(ks[9], (Cmid, n_filters))
    b3 = nrm(ks[10], (1, n_filters), 0.05)
    g3 = 1.0 + nrm(ks[11], (1, n_filters), 0.1)
    bt3 = nrm(ks[12], (1, n_filters), 0.1)

    params = (w1, b1, g1, bt1, wd, bd, g2, bt2, w3, b3, g3, bt3)

    ref = jax.block_until_ready(reference_forward(x, params))

    # exact-semantics path (f32 intermediates): tight tolerance
    fwd_f32 = jax.jit(functools.partial(decoder_block_forward, interm_dtype=jnp.float32))
    out = jax.block_until_ready(fwd_f32(x, params))
    assert out.shape == (N, n_filters, 2 * H, 2 * W), out.shape
    np.testing.assert_allclose(np.asarray(out), np.asarray(ref), rtol=2e-3, atol=2e-3)

    # multi-tile-per-image path (exercises the halo / lane-roll logic), still exact
    fwd_small = jax.jit(functools.partial(decoder_block_forward,
                                          interm_dtype=jnp.float32, max_tile_pixels=128))
    out_small = jax.block_until_ready(fwd_small(x, params))
    np.testing.assert_allclose(np.asarray(out_small), np.asarray(ref), rtol=2e-3, atol=2e-3)

    # default perf path (bfloat16 intermediate HBM streams): looser tolerance
    fwd_bf16 = jax.jit(decoder_block_forward)
    out_bf16 = jax.block_until_ready(fwd_bf16(x, params))
    np.testing.assert_allclose(np.asarray(out_bf16), np.asarray(ref), rtol=3e-2, atol=3e-2)

    print("KERNEL_OK")
</pallas_src>

<mosaic_0001>
module attributes {stable_mosaic.version = 11 : i64} {
  func.func @_stage1_kernel(%arg0: i32, %arg1: i32, %arg2: memref<1x32x256xf32, #tpu.memory_space<vmem>>, %arg3: memref<8x32xf32, #tpu.memory_space<vmem>>, %arg4: memref<8x1xf32, #tpu.memory_space<vmem>>, %arg5: memref<1x8x256xf32, #tpu.memory_space<vmem>>, %arg6: memref<8x128xf32, #tpu.memory_space<vmem>>, %arg7: memref<8x128xf32, #tpu.memory_space<vmem>>) attributes {dimension_semantics = [#tpu.dimension_semantics<parallel>, #tpu.dimension_semantics<parallel>], iteration_bounds = array<i64: 2, 1>, scalar_prefetch = 0 : i64, scratch_operands = 0 : i64, tpu.core_type = #tpu.core_type<tc>, window_params = [{transform_indices = @transform_0, window_bounds = array<i64: 1, 32, 256>}, {pipeline_mode = #tpu.pipeline_mode<synchronous>, transform_indices = @transform_1, window_bounds = array<i64: 8, 32>}, {pipeline_mode = #tpu.pipeline_mode<synchronous>, transform_indices = @transform_2, window_bounds = array<i64: 8, 1>}, {transform_indices = @transform_3, window_bounds = array<i64: 1, 8, 256>}, {transform_indices = @transform_4, window_bounds = array<i64: 8, 128>}, {transform_indices = @transform_5, window_bounds = array<i64: 8, 128>}]} {
    %c0 = arith.constant 0 : index
    %c0_0 = arith.constant 0 : index
    %0 = vector.load %arg3[%c0, %c0_0] : memref<8x32xf32, #tpu.memory_space<vmem>>, vector<8x32xf32>
    %c0_1 = arith.constant 0 : index
    %c0_2 = arith.constant 0 : index
    %c0_3 = arith.constant 0 : index
    %1 = vector.load %arg2[%c0_1, %c0_2, %c0_3] : memref<1x32x256xf32, #tpu.memory_space<vmem>>, vector<1x32x256xf32>
    %2 = vector.shape_cast %1 : vector<1x32x256xf32> to vector<32x256xf32>
    %cst = arith.constant dense<0.000000e+00> : vector<8x256xf32>
    %3 = tpu.matmul %0, %2, %cst {dimension_numbers = #tpu.dot_dimension_numbers<[1], [0], [0], [1], [0, 0, 1, 1], [], []>} : vector<8x32xf32>, vector<32x256xf32>, vector<8x256xf32> -> vector<8x256xf32>
    %c0_4 = arith.constant 0 : index
    %c0_5 = arith.constant 0 : index
    %4 = vector.load %arg4[%c0_4, %c0_5] : memref<8x1xf32, #tpu.memory_space<vmem>>, vector<8x1xf32>
    %5 = vector.broadcast %4 : vector<8x1xf32> to vector<8x256xf32>
    %6 = arith.addf %3, %5 : vector<8x256xf32>
    %c0_6 = arith.constant 0 : index
    %c0_7 = arith.constant 0 : index
    %c0_8 = arith.constant 0 : index
    %7 = vector.load %arg5[%c0_6, %c0_7, %c0_8] : memref<1x8x256xf32, #tpu.memory_space<vmem>>, vector<1x8x256xf32>
    %8 = vector.shape_cast %7 : vector<1x8x256xf32> to vector<8x256xf32>
    %9 = vector.shape_cast %6 : vector<8x256xf32> to vector<1x8x256xf32>
    tpu.vector_store %arg5[%c0_6, %c0_7, %c0_8], %9 {strides = array<i32>} : memref<1x8x256xf32, #tpu.memory_space<vmem>>, vector<1x8x256xf32>,
    %10 = tpu.iota {dimensions = array<i32: 1>} : vector<8x128xi32>
    %c0_i32 = arith.constant 0 : i32
    %11 = vector.broadcast %c0_i32 : i32 to vector<8x128xi32>
    %12 = arith.cmpi eq, %10, %11 : vector<8x128xi32>
    %cst_9 = arith.constant dense<0.000000e+00> : vector<8xf32>
    %13 = vector.multi_reduction <add>, %6, %cst_9 [1] : vector<8x256xf32> to vector<8xf32>
    %14 = vector.shape_cast %13 : vector<8xf32> to vector<8x1xf32>
    %cst_10 = arith.constant 0.000000e+00 : f32
    %15 = vector.shape_cast %14 : vector<8x1xf32> to vector<8x1xf32>
    %16 = vector.broadcast %15 : vector<8x1xf32> to vector<8x128xf32>
    %17 = vector.broadcast %cst_10 : f32 to vector<8x128xf32>
    %18 = arith.select %12, %16, %17 : vector<8x128xi1>, vector<8x128xf32>
    %c0_11 = arith.constant 0 : index
    %c0_12 = arith.constant 0 : index
    %19 = vector.load %arg6[%c0_11, %c0_12] : memref<8x128xf32, #tpu.memory_space<vmem>>, vector<8x128xf32>
    tpu.vector_store %arg6[%c0_11, %c0_12], %18 {strides = array<i32>} : memref<8x128xf32, #tpu.memory_space<vmem>>, vector<8x128xf32>,
    %20 = arith.mulf %6, %6 : vector<8x256xf32>
    %cst_13 = arith.constant dense<0.000000e+00> : vector<8xf32>
    %21 = vector.multi_reduction <add>, %20, %cst_13 [1] : vector<8x256xf32> to vector<8xf32>
    %22 = vector.shape_cast %21 : vector<8xf32> to vector<8x1xf32>
    %cst_14 = arith.constant 0.000000e+00 : f32
    %23 = vector.shape_cast %22 : vector<8x1xf32> to vector<8x1xf32>
    %24 = vector.broadcast %23 : vector<8x1xf32> to vector<8x128xf32>
    %25 = vector.broadcast %cst_14 : f32 to vector<8x128xf32>
    %26 = arith.select %12, %24, %25 : vector<8x128xi1>, vector<8x128xf32>
    %c0_15 = arith.constant 0 : index
    %c0_16 = arith.constant 0 : index
    %27 = vector.load %arg7[%c0_15, %c0_16] : memref<8x128xf32, #tpu.memory_space<vmem>>, vector<8x128xf32>
    tpu.vector_store %arg7[%c0_15, %c0_16], %26 {strides = array<i32>} : memref<8x128xf32, #tpu.memory_space<vmem>>, vector<8x128xf32>,
    return
  }
  func.func @transform_0(%arg0: i32, %arg1: i32) -> (i32, i32, i32) {
    %c0_i32 = arith.constant 0 : i32
    %c0_i32_0 = arith.constant 0 : i32
    return %arg0, %c0_i32, %arg1 : i32, i32, i32
  }
  func.func @transform_1(%arg0: i32, %arg1: i32) -> (i32, i32) {
    %c0_i32 = arith.constant 0 : i32
    %c0_i32_0 = arith.constant 0 : i32
    %c0_i32_1 = arith.constant 0 : i32
    return %c0_i32, %c0_i32_0 : i32, i32
  }
  func.func @transform_2(%arg0: i32, %arg1: i32) -> (i32, i32) {
    %c0_i32 = arith.constant 0 : i32
    %c0_i32_0 = arith.constant 0 : i32
    %c0_i32_1 = arith.constant 0 : i32
    return %c0_i32, %c0_i32_0 : i32, i32
  }
  func.func @transform_3(%arg0: i32, %arg1: i32) -> (i32, i32, i32) {
    %c0_i32 = arith.constant 0 : i32
    %c0_i32_0 = arith.constant 0 : i32
    return %arg0, %c0_i32, %arg1 : i32, i32, i32
  }
  func.func @transform_4(%arg0: i32, %arg1: i32) -> (i32, i32) {
    %c1_i32 = arith.constant 1 : i32
    %0 = arith.muli %arg0, %c1_i32 : i32
    %1 = arith.addi %0, %arg1 : i32
    %c0_i32 = arith.constant 0 : i32
    %c0_i32_0 = arith.constant 0 : i32
    return %c0_i32, %1 : i32, i32
  }
  func.func @transform_5(%arg0: i32, %arg1: i32) -> (i32, i32) {
    %c1_i32 = arith.constant 1 : i32
    %0 = arith.muli %arg0, %c1_i32 : i32
    %1 = arith.addi %0, %arg1 : i32
    %c0_i32 = arith.constant 0 : i32
    %c0_i32_0 = arith.constant 0 : i32
    return %c0_i32, %1 : i32, i32
  }
}

module attributes {stable_mosaic.version = 11 : i64} {
  func.func @_stage3_kernel(%arg0: i32, %arg1: i32, %arg2: memref<1x32x256xf32, #tpu.memory_space<vmem>>, %arg3: memref<32x1xf32, #tpu.memory_space<vmem>>, %arg4: memref<32x1xf32, #tpu.memory_space<vmem>>, %arg5: memref<16x8xf32, #tpu.memory_space<vmem>>, %arg6: memref<16x1xf32, #tpu.memory_space<vmem>>, %arg7: memref<1x64x256xf32, #tpu.memory_space<vmem>>, %arg8: memref<64x128xf32, #tpu.memory_space<vmem>>, %arg9: memref<64x128xf32, #tpu.memory_space<vmem>>) attributes {dimension_semantics = [#tpu.dimension_semantics<parallel>, #tpu.dimension_semantics<parallel>], iteration_bounds = array<i64: 2, 1>, scalar_prefetch = 0 : i64, scratch_operands = 0 : i64, tpu.core_type = #tpu.core_type<tc>, window_params = [{transform_indices = @transform_0, window_bounds = array<i64: 1, 32, 256>}, {pipeline_mode = #tpu.pipeline_mode<synchronous>, transform_indices = @transform_1, window_bounds = array<i64: 32, 1>}, {pipeline_mode = #tpu.pipeline_mode<synchronous>, transform_indices = @transform_2, window_bounds = array<i64: 32, 1>}, {pipeline_mode = #tpu.pipeline_mode<synchronous>, transform_indices = @transform_3, window_bounds = array<i64: 16, 8>}, {pipeline_mode = #tpu.pipeline_mode<synchronous>, transform_indices = @transform_4, window_bounds = array<i64: 16, 1>}, {transform_indices = @transform_5, window_bounds = array<i64: 1, 64, 256>}, {transform_indices = @transform_6, window_bounds = array<i64: 64, 128>}, {transform_indices = @transform_7, window_bounds = array<i64: 64, 128>}]} {
    %c0 = arith.constant 0 : index
    %c0_0 = arith.constant 0 : index
    %c0_1 = arith.constant 0 : index
    %0 = vector.load %arg2[%c0, %c0_0, %c0_1] : memref<1x32x256xf32, #tpu.memory_space<vmem>>, vector<1x32x256xf32>
    %1 = vector.shape_cast %0 : vector<1x32x256xf32> to vector<32x256xf32>
    %c0_2 = arith.constant 0 : index
    %c0_3 = arith.constant 0 : index
    %2 = vector.load %arg3[%c0_2, %c0_3] : memref<32x1xf32, #tpu.memory_space<vmem>>, vector<32x1xf32>
    %3 = vector.broadcast %2 : vector<32x1xf32> to vector<32x256xf32>
    %4 = arith.mulf %1, %3 : vector<32x256xf32>
    %c0_4 = arith.constant 0 : index
    %c0_5 = arith.constant 0 : index
    %5 = vector.load %arg4[%c0_4, %c0_5] : memref<32x1xf32, #tpu.memory_space<vmem>>, vector<32x1xf32>
    %6 = vector.broadcast %5 : vector<32x1xf32> to vector<32x256xf32>
    %7 = arith.addf %4, %6 : vector<32x256xf32>
    %cst = arith.constant 0.000000e+00 : f32
    %8 = vector.broadcast %cst : f32 to vector<32x256xf32>
    %9 = arith.maximumf %7, %8 : vector<32x256xf32>
    %c0_6 = arith.constant 0 : index
    %c0_7 = arith.constant 0 : index
    %10 = vector.load %arg5[%c0_6, %c0_7] : memref<16x8xf32, #tpu.memory_space<vmem>>, vector<16x8xf32>
    %c0_8 = arith.constant 0 : index
    %c0_9 = arith.constant 0 : index
    %11 = vector.load %arg6[%c0_8, %c0_9] : memref<16x1xf32, #tpu.memory_space<vmem>>, vector<16x1xf32>
    %12 = vector.extract_strided_slice %9 {offsets = [0, 0], sizes = [8, 256], strides = [1, 1]} : vector<32x256xf32> to vector<8x256xf32>
    %cst_10 = arith.constant dense<0.000000e+00> : vector<16x256xf32>
    %13 = tpu.matmul %10, %12, %cst_10 {dimension_numbers = #tpu.dot_dimension_numbers<[1], [0], [0], [1], [0, 0, 1, 1], [], []>} : vector<16x8xf32>, vector<8x256xf32>, vector<16x256xf32> -> vector<16x256xf32>
    %14 = vector.broadcast %11 : vector<16x1xf32> to vector<16x256xf32>
    %15 = arith.addf %13, %14 : vector<16x256xf32>
    %16 = vector.extract_strided_slice %9 {offsets = [8, 0], sizes = [8, 256], strides = [1, 1]} : vector<32x256xf32> to vector<8x256xf32>
    %cst_11 = arith.constant dense<0.000000e+00> : vector<16x256xf32>
    %17 = tpu.matmul %10, %16, %cst_11 {dimension_numbers = #tpu.dot_dimension_numbers<[1], [0], [0], [1], [0, 0, 1, 1], [], []>} : vector<16x8xf32>, vector<8x256xf32>, vector<16x256xf32> -> vector<16x256xf32>
    %18 = vector.broadcast %11 : vector<16x1xf32> to vector<16x256xf32>
    %19 = arith.addf %17, %18 : vector<16x256xf32>
    %20 = vector.extract_strided_slice %9 {offsets = [16, 0], sizes = [8, 256], strides = [1, 1]} : vector<32x256xf32> to vector<8x256xf32>
    %cst_12 = arith.constant dense<0.000000e+00> : vector<16x256xf32>
    %21 = tpu.matmul %10, %20, %cst_12 {dimension_numbers = #tpu.dot_dimension_numbers<[1], [0], [0], [1], [0, 0, 1, 1], [], []>} : vector<16x8xf32>, vector<8x256xf32>, vector<16x256xf32> -> vector<16x256xf32>
    %22 = vector.broadcast %11 : vector<16x1xf32> to vector<16x256xf32>
    %23 = arith.addf %21, %22 : vector<16x256xf32>
    %24 = vector.extract_strided_slice %9 {offsets = [24, 0], sizes = [8, 256], strides = [1, 1]} : vector<32x256xf32> to vector<8x256xf32>
    %cst_13 = arith.constant dense<0.000000e+00> : vector<16x256xf32>
    %25 = tpu.matmul %10, %24, %cst_13 {dimension_numbers = #tpu.dot_dimension_numbers<[1], [0], [0], [1], [0, 0, 1, 1], [], []>} : vector<16x8xf32>, vector<8x256xf32>, vector<16x256xf32> -> vector<16x256xf32>
    %26 = vector.broadcast %11 : vector<16x1xf32> to vector<16x256xf32>
    %27 = arith.addf %25, %26 : vector<16x256xf32>
    %28 = tpu.concatenate %15, %19, %23, %27 in 0 : vector<16x256xf32>, vector<16x256xf32>, vector<16x256xf32>, vector<16x256xf32> -> vector<64x256xf32>
    %c0_14 = arith.constant 0 : index
    %c0_15 = arith.constant 0 : index
    %c0_16 = arith.constant 0 : index
    %29 = vector.load %arg7[%c0_14, %c0_15, %c0_16] : memref<1x64x256xf32, #tpu.memory_space<vmem>>, vector<1x64x256xf32>
    %30 = vector.shape_cast %29 : vector<1x64x256xf32> to vector<64x256xf32>
    %31 = vector.shape_cast %28 : vector<64x256xf32> to vector<1x64x256xf32>
    tpu.vector_store %arg7[%c0_14, %c0_15, %c0_16], %31 {strides = array<i32>} : memref<1x64x256xf32, #tpu.memory_space<vmem>>, vector<1x64x256xf32>,
    %32 = tpu.iota {dimensions = array<i32: 1>} : vector<64x128xi32>
    %c0_i32 = arith.constant 0 : i32
    %33 = vector.broadcast %c0_i32 : i32 to vector<64x128xi32>
    %34 = arith.cmpi eq, %32, %33 : vector<64x128xi32>
    %cst_17 = arith.constant dense<0.000000e+00> : vector<64xf32>
    %35 = vector.multi_reduction <add>, %28, %cst_17 [1] : vector<64x256xf32> to vector<64xf32>
    %36 = vector.shape_cast %35 : vector<64xf32> to vector<64x1xf32>
    %cst_18 = arith.constant 0.000000e+00 : f32
    %37 = vector.shape_cast %36 : vector<64x1xf32> to vector<64x1xf32>
    %38 = vector.broadcast %37 : vector<64x1xf32> to vector<64x128xf32>
    %39 = vector.broadcast %cst_18 : f32 to vector<64x128xf32>
    %40 = arith.select %34, %38, %39 : vector<64x128xi1>, vector<64x128xf32>
    %c0_19 = arith.constant 0 : index
    %c0_20 = arith.constant 0 : index
    %41 = vector.load %arg8[%c0_19, %c0_20] : memref<64x128xf32, #tpu.memory_space<vmem>>, vector<64x128xf32>
    tpu.vector_store %arg8[%c0_19, %c0_20], %40 {strides = array<i32>} : memref<64x128xf32, #tpu.memory_space<vmem>>, vector<64x128xf32>,
    %42 = arith.mulf %28, %28 : vector<64x256xf32>
    %cst_21 = arith.constant dense<0.000000e+00> : vector<64xf32>
    %43 = vector.multi_reduction <add>, %42, %cst_21 [1] : vector<64x256xf32> to vector<64xf32>
    %44 = vector.shape_cast %43 : vector<64xf32> to vector<64x1xf32>
    %cst_22 = arith.constant 0.000000e+00 : f32
    %45 = vector.shape_cast %44 : vector<64x1xf32> to vector<64x1xf32>
    %46 = vector.broadcast %45 : vector<64x1xf32> to vector<64x128xf32>
    %47 = vector.broadcast %cst_22 : f32 to vector<64x128xf32>
    %48 = arith.select %34, %46, %47 : vector<64x128xi1>, vector<64x128xf32>
    %c0_23 = arith.constant 0 : index
    %c0_24 = arith.constant 0 : index
    %49 = vector.load %arg9[%c0_23, %c0_24] : memref<64x128xf32, #tpu.memory_space<vmem>>, vector<64x128xf32>
    tpu.vector_store %arg9[%c0_23, %c0_24], %48 {strides = array<i32>} : memref<64x128xf32, #tpu.memory_space<vmem>>, vector<64x128xf32>,
    return
  }
  func.func @transform_0(%arg0: i32, %arg1: i32) -> (i32, i32, i32) {
    %c0_i32 = arith.constant 0 : i32
    %c0_i32_0 = arith.constant 0 : i32
    return %arg0, %c0_i32, %arg1 : i32, i32, i32
  }
  func.func @transform_1(%arg0: i32, %arg1: i32) -> (i32, i32) {
    %c0_i32 = arith.constant 0 : i32
    %c0_i32_0 = arith.constant 0 : i32
    %c0_i32_1 = arith.constant 0 : i32
    return %c0_i32, %c0_i32_0 : i32, i32
  }
  func.func @transform_2(%arg0: i32, %arg1: i32) -> (i32, i32) {
    %c0_i32 = arith.constant 0 : i32
    %c0_i32_0 = arith.constant 0 : i32
    %c0_i32_1 = arith.constant 0 : i32
    return %c0_i32, %c0_i32_0 : i32, i32
  }
  func.func @transform_3(%arg0: i32, %arg1: i32) -> (i32, i32) {
    %c0_i32 = arith.constant 0 : i32
    %c0_i32_0 = arith.constant 0 : i32
    %c0_i32_1 = arith.constant 0 : i32
    return %c0_i32, %c0_i32_0 : i32, i32
  }
  func.func @transform_4(%arg0: i32, %arg1: i32) -> (i32, i32) {
    %c0_i32 = arith.constant 0 : i32
    %c0_i32_0 = arith.constant 0 : i32
    %c0_i32_1 = arith.constant 0 : i32
    return %c0_i32, %c0_i32_0 : i32, i32
  }
  func.func @transform_5(%arg0: i32, %arg1: i32) -> (i32, i32, i32) {
    %c0_i32 = arith.constant 0 : i32
    %c0_i32_0 = arith.constant 0 : i32
    return %arg0, %c0_i32, %arg1 : i32, i32, i32
  }
  func.func @transform_6(%arg0: i32, %arg1: i32) -> (i32, i32) {
    %c1_i32 = arith.constant 1 : i32
    %0 = arith.muli %arg0, %c1_i32 : i32
    %1 = arith.addi %0, %arg1 : i32
    %c0_i32 = arith.constant 0 : i32
    %c0_i32_0 = arith.constant 0 : i32
    return %c0_i32, %1 : i32, i32
  }
  func.func @transform_7(%arg0: i32, %arg1: i32) -> (i32, i32) {
    %c1_i32 = arith.constant 1 : i32
    %0 = arith.muli %arg0, %c1_i32 : i32
    %1 = arith.addi %0, %arg1 : i32
    %c0_i32 = arith.constant 0 : i32
    %c0_i32_0 = arith.constant 0 : i32
    return %c0_i32, %1 : i32, i32
  }
}

module attributes {stable_mosaic.version = 11 : i64} {
  func.func @_stage2_kernel(%arg0: i32, %arg1: i32, %arg2: memref<1x8x256xf32, #tpu.memory_space<vmem>>, %arg3: memref<1x8x128xf32, #tpu.memory_space<vmem>>, %arg4: memref<8x1xf32, #tpu.memory_space<vmem>>, %arg5: memref<8x1xf32, #tpu.memory_space<vmem>>, %arg6: memref<32x32xf32, #tpu.memory_space<vmem>>, %arg7: memref<32x1xf32, #tpu.memory_space<vmem>>, %arg8: memref<1x32x256xf32, #tpu.memory_space<vmem>>, %arg9: memref<32x128xf32, #tpu.memory_space<vmem>>, %arg10: memref<32x128xf32, #tpu.memory_space<vmem>>) attributes {dimension_semantics = [#tpu.dimension_semantics<parallel>, #tpu.dimension_semantics<parallel>], iteration_bounds = array<i64: 2, 1>, scalar_prefetch = 0 : i64, scratch_operands = 0 : i64, tpu.core_type = #tpu.core_type<tc>, window_params = [{transform_indices = @transform_0, window_bounds = array<i64: 1, 8, 256>}, {transform_indices = @transform_1, window_bounds = array<i64: 1, 8, 128>}, {pipeline_mode = #tpu.pipeline_mode<synchronous>, transform_indices = @transform_2, window_bounds = array<i64: 8, 1>}, {pipeline_mode = #tpu.pipeline_mode<synchronous>, transform_indices = @transform_3, window_bounds = array<i64: 8, 1>}, {pipeline_mode = #tpu.pipeline_mode<synchronous>, transform_indices = @transform_4, window_bounds = array<i64: 32, 32>}, {pipeline_mode = #tpu.pipeline_mode<synchronous>, transform_indices = @transform_5, window_bounds = array<i64: 32, 1>}, {transform_indices = @transform_6, window_bounds = array<i64: 1, 32, 256>}, {transform_indices = @transform_7, window_bounds = array<i64: 32, 128>}, {transform_indices = @transform_8, window_bounds = array<i64: 32, 128>}]} {
    %c0 = arith.constant 0 : index
    %c0_0 = arith.constant 0 : index
    %0 = vector.load %arg4[%c0, %c0_0] : memref<8x1xf32, #tpu.memory_space<vmem>>, vector<8x1xf32>
    %c0_1 = arith.constant 0 : index
    %c0_2 = arith.constant 0 : index
    %1 = vector.load %arg5[%c0_1, %c0_2] : memref<8x1xf32, #tpu.memory_space<vmem>>, vector<8x1xf32>
    %c0_3 = arith.constant 0 : index
    %c0_4 = arith.constant 0 : index
    %c0_5 = arith.constant 0 : index
    %2 = vector.load %arg2[%c0_3, %c0_4, %c0_5] : memref<1x8x256xf32, #tpu.memory_space<vmem>>, vector<1x8x256xf32>
    %3 = vector.shape_cast %2 : vector<1x8x256xf32> to vector<8x256xf32>
    %4 = vector.broadcast %0 : vector<8x1xf32> to vector<8x256xf32>
    %5 = arith.mulf %3, %4 : vector<8x256xf32>
    %6 = vector.broadcast %1 : vector<8x1xf32> to vector<8x256xf32>
    %7 = arith.addf %5, %6 : vector<8x256xf32>
    %cst = arith.constant 0.000000e+00 : f32
    %8 = vector.broadcast %cst : f32 to vector<8x256xf32>
    %9 = arith.maximumf %7, %8 : vector<8x256xf32>
    %c0_6 = arith.constant 0 : index
    %c0_7 = arith.constant 0 : index
    %c0_8 = arith.constant 0 : index
    %10 = vector.load %arg3[%c0_6, %c0_7, %c0_8] : memref<1x8x128xf32, #tpu.memory_space<vmem>>, vector<1x8x128xf32>
    %11 = vector.shape_cast %10 : vector<1x8x128xf32> to vector<8x128xf32>
    %12 = vector.broadcast %0 : vector<8x1xf32> to vector<8x128xf32>
    %13 = arith.mulf %11, %12 : vector<8x128xf32>
    %14 = vector.broadcast %1 : vector<8x1xf32> to vector<8x128xf32>
    %15 = arith.addf %13, %14 : vector<8x128xf32>
    %cst_9 = arith.constant 0.000000e+00 : f32
    %16 = vector.broadcast %cst_9 : f32 to vector<8x128xf32>
    %17 = arith.maximumf %15, %16 : vector<8x128xf32>
    %c0_i32 = arith.constant 0 : i32
    %18 = arith.cmpi eq, %arg1, %c0_i32 : i32
    %cst_10 = arith.constant 0.000000e+00 : f32
    %cst_11 = arith.constant 1.000000e+00 : f32
    %19 = arith.select %18, %cst_10, %cst_11 : f32
    %20 = vector.broadcast %19 : f32 to vector<8x128xf32>
    %21 = arith.mulf %17, %20 : vector<8x128xf32>
    %cst_12 = arith.constant 0.000000e+00 : f32
    %22 = vector.broadcast %cst_12 : f32 to vector<8x128xf32>
    %23 = tpu.concatenate %21, %22 in 1 : vector<8x128xf32>, vector<8x128xf32> -> vector<8x256xf32>
    %c240_i32 = arith.constant 240 : i32
    %24 = tpu.dynamic_rotate %23 by %c240_i32 dim 1 : vector<8x256xf32>, i32 -> vector<8x256xf32>
    %25 = tpu.iota {dimensions = array<i32: 1>} : vector<1x256xi32>
    %c16_i32 = arith.constant 16 : i32
    %c0_i32_13 = arith.constant 0 : i32
    %26 = arith.cmpi eq, %c16_i32, %c0_i32_13 : i32
    %c1_i32 = arith.constant 1 : i32
    %27 = arith.select %26, %c1_i32, %c16_i32 : i32
    %28 = vector.broadcast %27 : i32 to vector<1x256xi32>
    %29 = arith.remsi %25, %28 : vector<1x256xi32>
    %c0_i32_14 = arith.constant 0 : i32
    %30 = vector.broadcast %c0_i32_14 : i32 to vector<1x256xi32>
    %31 = arith.cmpi ne, %29, %30 : vector<1x256xi32>
    %c0_i32_15 = arith.constant 0 : i32
    %32 = vector.broadcast %c0_i32_15 : i32 to vector<1x256xi32>
    %33 = arith.cmpi slt, %29, %32 : vector<1x256xi32>
    %c0_i32_16 = arith.constant 0 : i32
    %34 = arith.cmpi slt, %27, %c0_i32_16 : i32
    %35 = vector.broadcast %34 : i1 to vector<1x256xi1>
    %36 = vector.broadcast %35 : vector<1x256xi1> to vector<1x256xi1>
    %37 = arith.xori %33, %36 : vector<1x256xi1>
    %38 = arith.andi %37, %31 : vector<1x256xi1>
    %39 = vector.broadcast %27 : i32 to vector<1x256xi32>
    %40 = arith.addi %29, %39 : vector<1x256xi32>
    %41 = arith.select %38, %40, %29 : vector<1x256xi1>, vector<1x256xi32>
    %c15_i32 = arith.constant 15 : i32
    %42 = vector.broadcast %c15_i32 : i32 to vector<1x256xi32>
    %43 = arith.cmpi ne, %41, %42 : vector<1x256xi32>
    %44 = arith.extui %43 : vector<1x256xi1> to vector<1x256xi32>
    %45 = arith.sitofp %44 : vector<1x256xi32> to vector<1x256xf32>
    %c240_i32_17 = arith.constant 240 : i32
    %46 = vector.broadcast %c240_i32_17 : i32 to vector<1x256xi32>
    %47 = arith.cmpi sge, %25, %46 : vector<1x256xi32>
    %c255_i32 = arith.constant 255 : i32
    %48 = tpu.dynamic_rotate %9 by %c255_i32 dim 1 : vector<8x256xf32>, i32 -> vector<8x256xf32>
    %49 = vector.broadcast %45 : vector<1x256xf32> to vector<8x256xf32>
    %50 = arith.mulf %48, %49 : vector<8x256xf32>
    %c240_i32_18 = arith.constant 240 : i32
    %51 = tpu.dynamic_rotate %9 by %c240_i32_18 dim 1 : vector<8x256xf32>, i32 -> vector<8x256xf32>
    %52 = vector.shape_cast %47 : vector<1x256xi1> to vector<1x256xi1>
    %53 = vector.broadcast %52 : vector<1x256xi1> to vector<8x256xi1>
    %54 = arith.select %53, %24, %51 : vector<8x256xi1>, vector<8x256xf32>
    %c255_i32_19 = arith.constant 255 : i32
    %55 = tpu.dynamic_rotate %54 by %c255_i32_19 dim 1 : vector<8x256xf32>, i32 -> vector<8x256xf32>
    %56 = vector.broadcast %45 : vector<1x256xf32> to vector<8x256xf32>
    %57 = arith.mulf %55, %56 : vector<8x256xf32>
    %58 = tpu.concatenate %9, %50, %54, %57 in 0 : vector<8x256xf32>, vector<8x256xf32>, vector<8x256xf32>, vector<8x256xf32> -> vector<32x256xf32>
    %c0_20 = arith.constant 0 : index
    %c0_21 = arith.constant 0 : index
    %59 = vector.load %arg6[%c0_20, %c0_21] : memref<32x32xf32, #tpu.memory_space<vmem>>, vector<32x32xf32>
    %cst_22 = arith.constant dense<0.000000e+00> : vector<32x256xf32>
    %60 = tpu.matmul %59, %58, %cst_22 {dimension_numbers = #tpu.dot_dimension_numbers<[1], [0], [0], [1], [0, 0, 1, 1], [], []>} : vector<32x32xf32>, vector<32x256xf32>, vector<32x256xf32> -> vector<32x256xf32>
    %c0_23 = arith.constant 0 : index
    %c0_24 = arith.constant 0 : index
    %61 = vector.load %arg7[%c0_23, %c0_24] : memref<32x1xf32, #tpu.memory_space<vmem>>, vector<32x1xf32>
    %62 = vector.broadcast %61 : vector<32x1xf32> to vector<32x256xf32>
    %63 = arith.addf %60, %62 : vector<32x256xf32>
    %c0_25 = arith.constant 0 : index
    %c0_26 = arith.constant 0 : index
    %c0_27 = arith.constant 0 : index
    %64 = vector.load %arg8[%c0_25, %c0_26, %c0_27] : memref<1x32x256xf32, #tpu.memory_space<vmem>>, vector<1x32x256xf32>
    %65 = vector.shape_cast %64 : vector<1x32x256xf32> to vector<32x256xf32>
    %66 = vector.shape_cast %63 : vector<32x256xf32> to vector<1x32x256xf32>
    tpu.vector_store %arg8[%c0_25, %c0_26, %c0_27], %66 {strides = array<i32>} : memref<1x32x256xf32, #tpu.memory_space<vmem>>, vector<1x32x256xf32>,
    %67 = tpu.iota {dimensions = array<i32: 1>} : vector<32x128xi32>
    %c0_i32_28 = arith.constant 0 : i32
    %68 = vector.broadcast %c0_i32_28 : i32 to vector<32x128xi32>
    %69 = arith.cmpi eq, %67, %68 : vector<32x128xi32>
    %cst_29 = arith.constant dense<0.000000e+00> : vector<32xf32>
    %70 = vector.multi_reduction <add>, %63, %cst_29 [1] : vector<32x256xf32> to vector<32xf32>
    %71 = vector.shape_cast %70 : vector<32xf32> to vector<32x1xf32>
    %cst_30 = arith.constant 0.000000e+00 : f32
    %72 = vector.shape_cast %71 : vector<32x1xf32> to vector<32x1xf32>
    %73 = vector.broadcast %72 : vector<32x1xf32> to vector<32x128xf32>
    %74 = vector.broadcast %cst_30 : f32 to vector<32x128xf32>
    %75 = arith.select %69, %73, %74 : vector<32x128xi1>, vector<32x128xf32>
    %c0_31 = arith.constant 0 : index
    %c0_32 = arith.constant 0 : index
    %76 = vector.load %arg9[%c0_31, %c0_32] : memref<32x128xf32, #tpu.memory_space<vmem>>, vector<32x128xf32>
    tpu.vector_store %arg9[%c0_31, %c0_32], %75 {strides = array<i32>} : memref<32x128xf32, #tpu.memory_space<vmem>>, vector<32x128xf32>,
    %77 = arith.mulf %63, %63 : vector<32x256xf32>
    %cst_33 = arith.constant dense<0.000000e+00> : vector<32xf32>
    %78 = vector.multi_reduction <add>, %77, %cst_33 [1] : vector<32x256xf32> to vector<32xf32>
    %79 = vector.shape_cast %78 : vector<32xf32> to vector<32x1xf32>
    %cst_34 = arith.constant 0.000000e+00 : f32
    %80 = vector.shape_cast %79 : vector<32x1xf32> to vector<32x1xf32>
    %81 = vector.broadcast %80 : vector<32x1xf32> to vector<32x128xf32>
    %82 = vector.broadcast %cst_34 : f32 to vector<32x128xf32>
    %83 = arith.select %69, %81, %82 : vector<32x128xi1>, vector<32x128xf32>
    %c0_35 = arith.constant 0 : index
    %c0_36 = arith.constant 0 : index
    %84 = vector.load %arg10[%c0_35, %c0_36] : memref<32x128xf32, #tpu.memory_space<vmem>>, vector<32x128xf32>
    tpu.vector_store %arg10[%c0_35, %c0_36], %83 {strides = array<i32>} : memref<32x128xf32, #tpu.memory_space<vmem>>, vector<32x128xf32>,
    return
  }
  func.func @transform_0(%arg0: i32, %arg1: i32) -> (i32, i32, i32) {
    %c0_i32 = arith.constant 0 : i32
    %c0_i32_0 = arith.constant 0 : i32
    return %arg0, %c0_i32, %arg1 : i32, i32, i32
  }
  func.func @transform_1(%arg0: i32, %arg1: i32) -> (i32, i32, i32) {
    %c1_i32 = arith.constant 1 : i32
    %0 = arith.addi %arg1, %c1_i32 : i32
    %c2_i32 = arith.constant 2 : i32
    %1 = arith.muli %0, %c2_i32 : i32
    %c1_i32_0 = arith.constant 1 : i32
    %2 = arith.minsi %1, %c1_i32_0 : i32
    %c0_i32 = arith.constant 0 : i32
    %c0_i32_1 = arith.constant 0 : i32
    return %arg0, %c0_i32, %2 : i32, i32, i32
  }
  func.func @transform_2(%arg0: i32, %arg1: i32) -> (i32, i32) {
    %c0_i32 = arith.constant 0 : i32
    %c0_i32_0 = arith.constant 0 : i32
    %c0_i32_1 = arith.constant 0 : i32
    return %c0_i32, %c0_i32_0 : i32, i32
  }
  func.func @transform_3(%arg0: i32, %arg1: i32) -> (i32, i32) {
    %c0_i32 = arith.constant 0 : i32
    %c0_i32_0 = arith.constant 0 : i32
    %c0_i32_1 = arith.constant 0 : i32
    return %c0_i32, %c0_i32_0 : i32, i32
  }
  func.func @transform_4(%arg0: i32, %arg1: i32) -> (i32, i32) {
    %c0_i32 = arith.constant 0 : i32
    %c0_i32_0 = arith.constant 0 : i32
    %c0_i32_1 = arith.constant 0 : i32
    return %c0_i32, %c0_i32_0 : i32, i32
  }
  func.func @transform_5(%arg0: i32, %arg1: i32) -> (i32, i32) {
    %c0_i32 = arith.constant 0 : i32
    %c0_i32_0 = arith.constant 0 : i32
    %c0_i32_1 = arith.constant 0 : i32
    return %c0_i32, %c0_i32_0 : i32, i32
  }
  func.func @transform_6(%arg0: i32, %arg1: i32) -> (i32, i32, i32) {
    %c0_i32 = arith.constant 0 : i32
    %c0_i32_0 = arith.constant 0 : i32
    return %arg0, %c0_i32, %arg1 : i32, i32, i32
  }
  func.func @transform_7(%arg0: i32, %arg1: i32) -> (i32, i32) {
    %c1_i32 = arith.constant 1 : i32
    %0 = arith.muli %arg0, %c1_i32 : i32
    %1 = arith.addi %0, %arg1 : i32
    %c0_i32 = arith.constant 0 : i32
    %c0_i32_0 = arith.constant 0 : i32
    return %c0_i32, %1 : i32, i32
  }
  func.func @transform_8(%arg0: i32, %arg1: i32) -> (i32, i32) {
    %c1_i32 = arith.constant 1 : i32
    %0 = arith.muli %arg0, %c1_i32 : i32
    %1 = arith.addi %0, %arg1 : i32
    %c0_i32 = arith.constant 0 : i32
    %c0_i32_0 = arith.constant 0 : i32
    return %c0_i32, %1 : i32, i32
  }
}

</mosaic_0001>

<bundles_post_ra>
// kernel: tile.28
= control target key start
LH: loop header
LB: loop body
LE: loop exit
PB: predicated region body
PF: predicated region fallthrough
CT: control target
= control target key end

     0   :  { %s22_s0 = inlined_call_operand.vmem [shape: f32[8], index: 0, kind: input, shape index: {}]   ;;  %s23_s1 = inlined_call_operand.vmem [shape: f32[4,8], index: 1, kind: output, shape index: {}]  }
   0x1   :  { %v4_v0 = vld [vmem:[%s22_s0] ss:$0 sm:$0xff] }
   0x2   :  { %5 = vst [vmem:[%s23_s1] sm:$0xf] %v4_v0 }

// kernel: tile.0
= control target key start
LH: loop header
LB: loop body
LE: loop exit
PB: predicated region body
PF: predicated region fallthrough
CT: control target
= control target key end

     0   :  { %s66_s8 = smov 125   ;;  %vm7_vm0 = vcmask 7168   ;;  %s67_s11 = smov 126   ;;  %s117_s0 = inlined_call_operand.vmem [shape: f32[4,8], index: 0, kind: input, shape index: {}]   ;;  %s118_s1 = inlined_call_operand.vmem [shape: f32[32,1], index: 1, kind: output, shape index: {}]  }
   0x1   :  { %v4_v0 = vld [vmem:[%s117_s0] sm:$0xf]  ;;  %s65_s0 = smov 127   ;;  %s68_s12 = smov 124  }
   0x2   :  { %5 = vst [vmem:[#allocation0] sm:$0xf] %v4_v0  ;;  %s69_s13 = smov 123   ;;  %s70_s14 = smov 122  }
   0x3   :  { %s71_s15 = smov 121  }
   0x9   :  { %v9_v1 = vld [vmem:[#allocation0] sm:$0xf]  }
   0xa   :  { %v21_v2 = vld [vmem:[#allocation0] sm:$0xf]   ;;  %10 = vrot.lane.b32.xlu0 %v9_v1, %s65_s0 }
   0xb   :  { %22 = vrot.lane.b32.xlu1 %v21_v2, %s66_s8  ;;  %v15_v3 = vld [vmem:[#allocation0] sm:$0xf]  }
   0xc   :  { %v27_v4 = vld [vmem:[#allocation0] sm:$0xf]  }
   0xd   :  { %v6_v5 = vld [vmem:[#allocation0] sm:$0xf]  }
   0xe   :  { %8 = vst.msk [vmem:[%s118_s1] ss:$8 sm:$0xf] %vm7_vm0, %v6_v5   ;;  %16 = vrot.lane.b32.xlu0 %v15_v3, %s67_s11  ;;  %v33_v6 = vld [vmem:[#allocation0] sm:$0xf]  }
   0xf   :  { %28 = vrot.lane.b32.xlu1 %v27_v4, %s68_s12  ;;  %v39_v7 = vld [vmem:[#allocation0] sm:$0xf]  }
  0x10   :  { %v45_v8 = vld [vmem:[#allocation0] sm:$0xf]  }
  0x12   :  { %34 = vrot.lane.b32.xlu0 %v33_v6, %s69_s13 }
  0x13   :  { %40 = vrot.lane.b32.xlu1 %v39_v7, %s70_s14 }
  0x16   :  { %46 = vrot.lane.b32.xlu0 %v45_v8, %s71_s15 }
  0x7c   :  { %v11_v9 = vpop.permute.xlu0 %10  }
  0x7d   :  { %v23_v10 = vpop.permute.xlu1 %22   ;;  %51 = vst.msk [vmem:[%s118_s1 + $0x1] ss:$8 sm:$0xf] %vm7_vm0, %v11_v9  }
  0x7e   :  { %53 = vst.msk [vmem:[%s118_s1 + $0x3] ss:$8 sm:$0xf] %vm7_vm0, %v23_v10  }
  0x80   :  { %v17_v11 = vpop.permute.xlu0 %16  }
  0x81   :  { %v29_v12 = vpop.permute.xlu1 %28   ;;  %52 = vst.msk [vmem:[%s118_s1 + $0x2] ss:$8 sm:$0xf] %vm7_vm0, %v17_v11  }
  0x82   :  { %54 = vst.msk [vmem:[%s118_s1 + $0x4] ss:$8 sm:$0xf] %vm7_vm0, %v29_v12  }
  0x84   :  { %v35_v13 = vpop.permute.xlu0 %34  }
  0x85   :  { %v41_v14 = vpop.permute.xlu1 %40   ;;  %55 = vst.msk [vmem:[%s118_s1 + $0x5] ss:$8 sm:$0xf] %vm7_vm0, %v35_v13  }
  0x86   :  { %56 = vst.msk [vmem:[%s118_s1 + $0x6] ss:$8 sm:$0xf] %vm7_vm0, %v41_v14  }
  0x88   :  { %v47_v15 = vpop.permute.xlu0 %46  }
  0x89   :  { %57 = vst.msk [vmem:[%s118_s1 + $0x7] ss:$8 sm:$0xf] %vm7_vm0, %v47_v15  }

// kernel: tile.45
= control target key start
LH: loop header
LB: loop body
LE: loop exit
PB: predicated region body
PF: predicated region fallthrough
CT: control target
= control target key end

     0   :  { %s22_s0 = inlined_call_operand.vmem [shape: f32[16], index: 0, kind: input, shape index: {}]   ;;  %s23_s1 = inlined_call_operand.vmem [shape: f32[4,16], index: 1, kind: output, shape index: {}]  }
   0x1   :  { %v4_v0 = vld [vmem:[%s22_s0] ss:$0 sm:$0xff] }
   0x2   :  { %5 = vst [vmem:[%s23_s1] sm:$0xf] %v4_v0 }

// kernel: mul.23
= control target key start
LH: loop header
LB: loop body
LE: loop exit
PB: predicated region body
PF: predicated region fallthrough
CT: control target
= control target key end

     0   :  { %vm7_vm0 = vcmask 130048   ;;  %s37_s8 = smov 16   ;;  %s38_s9 = smov 32   ;;  %vm13_vm1 = vcmask 523648   ;;  %vm19_vm2 = vcmask 392448   ;;  %vm25_vm3 = vcmask 261248   ;;  %s55_s0 = inlined_call_operand.vmem [shape: f32[4,16], index: 0, kind: input, shape index: {}]   ;;  %s56_s1 = inlined_call_operand.vmem [shape: f32[64], index: 1, kind: output, shape index: {}]  }
   0x1   :  { %v4_v0 = vld [vmem:[%s55_s0] sm:$0xf]  ;;  %s36_s0 = smov 48  }
   0x2   :  { %5 = vst [vmem:[#allocation1] sm:$0xf] %v4_v0 }
   0x9   :  { %v10_v1 = vld [vmem:[#allocation1 + $0x3] sm:$0x1]   ;;  %v22_v2 = vld [vmem:[#allocation1 + $0x1] sm:$0x1]   ;;  %v6_v3 = vld [vmem:[#allocation1] sm:$0x1]  }
   0xa   :  { %11 = vrot.lane.b32.xlu0 %v10_v1, %s36_s0  ;;  %23 = vrot.lane.b32.xlu1 %v22_v2, %s37_s8  ;;  %v16_v4 = vld [vmem:[#allocation1 + $0x2] sm:$0x1]   ;;  %8 = vst.msk [vmem:[#allocation0] sm:$0x1] %vm7_vm0, %v6_v3  }
   0xe   :  { %17 = vrot.lane.b32.xlu0 %v16_v4, %s38_s9 }
  0x7c   :  { %v12_v5 = vpop.permute.xlu0 %11   ;;  %v24_v6 = vpop.permute.xlu1 %23  }
  0x7d   :  { %14 = vst.msk [vmem:[#allocation0] sm:$0x1] %vm13_vm1, %v12_v5  }
  0x80   :  { %v18_v7 = vpop.permute.xlu0 %17  }
  0x81   :  { %20 = vst.msk [vmem:[#allocation0] sm:$0x1] %vm19_vm2, %v18_v7  }
  0x82   :  { %26 = vst.msk [vmem:[#allocation0] sm:$0x1] %vm25_vm3, %v24_v6  }
  0x89   :  { %v30_v8 = vld [vmem:[#allocation0] sm:$0x1] }
  0x8a   :  { %32 = vst [vmem:[%s56_s1] sm:$0x1] %v30_v8 }

// kernel: decoder_block_forward.3
= control target key start
LH: loop header
LB: loop body
LE: loop exit
PB: predicated region body
PF: predicated region fallthrough
CT: control target
= control target key end

     0   :  { %s664_s18 = smov 0   ;;  %s666_s19 = smov 0   ;;  %s714_s0 = inlined_call_operand.vmem [shape: f32[2,32,256], index: 0, kind: input, shape index: {}]   ;;  %s715_s1 = inlined_call_operand.vmem [shape: f32[8,32], index: 1, kind: input, shape index: {}]   ;;  %s716_s2 = inlined_call_operand.vmem [shape: f32[8,1], index: 2, kind: input, shape index: {}]   ;;  %s717_s3 = inlined_call_operand.vmem [shape: f32[2,8,256], index: 3, kind: output, shape index: {0}]   ;;  %s718_s4 = inlined_call_operand.vmem [shape: f32[8,256], index: 4, kind: output, shape index: {1}]   ;;  %s719_s5 = inlined_call_operand.vmem [shape: f32[8,256], index: 5, kind: output, shape index: {2}]  }
   0x1   :  { %s668_s20 = smov 0  }
   0x2 LB: > { %s28_s21 = sadd.s32 1, %s626_s19  ;;  %p561_p0 = scmp.ge.s32.totalorder %s630_s20, 1  ;;  %s630_s20 = sphi %s668_s20, %s16_s20   ;;  %s626_s19 = sphi %s666_s19, %s721_s19   ;;  %s622_s18 = sphi %s664_s18, %s720_s18  }
   0x3   : > { %p30_p1 = scmp.ge.s32.totalorder %s28_s21, 2  ;;  %p217_p2 = scmp.lt.s32.totalorder %s630_s20, 3 }
   0x5   : > { %s723_s21 = smov (%p30_p1, %s28_s21), 0  ;;  %p218_p3 = pnand %p561_p0, %p217_p2 }
   0x6   : > { %p264_p4 = scmp.lt.s32.totalorder (!%p218_p3), %s622_s18, 1  ;;  %v304_v0 = vld [vmem:[%s716_s2] sm:$0xff] (!%p218_p3)  ;;  %v632_v1 = vmov (!%p218_p3), 0.0   ;;  %v633_v2 = vmov (!%p218_p3), 0   ;;  %vm310_vm0 = vcmask (!%p218_p3), 261120   ;;  %v387_v25 = vlaneseq (!%p218_p3) }
   0x7   : > { %221 = sbr.rel (%p218_p3) target bundleno = 391 (0x187), region = 32  ;;  %378 = vmatprep.mubr.f32.mxu0 (!%p218_p3), %v632_v1  ;;  %607 = vset.pattern.permute.xlu0 (!%p218_p3), %v633_v2  ;;  %v295_v15 = vld [vmem:[%s715_s1] sm:$0xff] (!%p218_p3) }
   0x8   : > { %307 = vperm.xlu0 (!%p218_p3), %607, %v304_v0   ;;  %v388_v26 = vand.u32 (!%p218_p3), 127, %v387_v25 }
   0xa   : > { %vm389_vm1 = vcmp.eq.s32.totalorder (!%p218_p3), %v388_v26, 0 }
   0xe   : > { %s725_s18 = smov (!%p264_p4, %s622_s18), 1 }
   0xf   : > { %s571_s24 = sshll.u32 %s725_s18, 6  ;;  %s572_s30 = sshll.u32 %s725_s18, 4 }
  0x10   : > { %s271_s27 = scalar_lea.vmem %s714_s0, %s571_s24  ;;  %s281_s8 = scalar_lea.vmem %s717_s3, %s572_s30 }
  0x11   : > { %v297_v3 = vld [vmem:[%s271_s27 + $0x8] sm:$0xff]  ;;  %v299_v4 = vld [vmem:[%s271_s27 + $0x18] sm:$0xff]  ;;  %v296_v5 = vld [vmem:[%s271_s27] sm:$0xff]  ;;  %s566_s9 = sshll.u32 %s725_s18, 3 }
  0x12   : > { %v573_v6 = vpack.c.bf16 %v299_v4, %v297_v3  ;;  %v298_v7 = vld [vmem:[%s271_s27 + $0x10] sm:$0xff]  ;;  %v301_v8 = vld [vmem:[%s271_s27 + $0x28] sm:$0xff]  ;;  %v303_v9 = vld [vmem:[%s271_s27 + $0x38] sm:$0xff]  ;;  %s287_s12 = scalar_lea.vmem %s718_s4, %s566_s9  ;;  %s293_s15 = scalar_lea.vmem %s719_s5, %s566_s9 }
  0x13   : > { %v575_v10 = vpack.c.bf16 %v298_v7, %v296_v5  ;;  %v577_v11 = vpack.c.bf16 %v303_v9, %v301_v8  ;;  %v300_v12 = vld [vmem:[%s271_s27 + $0x20] sm:$0xff]  ;;  %v302_v13 = vld [vmem:[%s271_s27 + $0x30] sm:$0xff] }
  0x14   : > { %574 = vmatprep.subr.bf16.mxu0 %v573_v6  ;;  %v579_v14 = vpack.c.bf16 %v302_v13, %v300_v12 }
  0x15   : > { %576 = vmatpush1.bf16.msra.mxu0 %v575_v10 }
  0x16   : > { %578 = vmatprep.subr.bf16.mxu0 %v577_v11 }
  0x19   : > { %580 = vmatpush1.bf16.msra.mxu0 %v579_v14 }
  0x1c   : > { %568 = vmatmul.mubr.msk.f32.vlgmr.msra.gmra.mrb[0].mxu0 %vm310_vm0, %v295_v15 }
  0x87   : > { %v308_v16 = vpop.permute.xlu0 %307 }
  0xef   : > { %v380_v17 = vpop.f32.mrb[0].mxu0 }
  0xf0   : > { %v381_v18 = vadd.f32 %v380_v17, %v308_v16  ;;  %v382_v19 = vpop.f32.mrb[1].mxu0 }
  0xf1   : > { %v383_v20 = vadd.f32 %v382_v19, %v308_v16 }
  0xf2   : > { %385 = vst [vmem:[%s281_s8] sm:$0xff] %v381_v18  ;;  %v395_v21 = vmul.f32 %v381_v18, %v381_v18 }
  0xf3   : > { %386 = vst [vmem:[%s281_s8 + $0x8] sm:$0xff] %v383_v20  ;;  %v390_v22 = vadd.f32 %v383_v20, %v381_v18  ;;  %v396_v23 = vmul.f32 %v383_v20, %v383_v20 }
  0xf5   : > { %391 = vadd.xlane.f32.xlu0 %v390_v22  ;;  %v397_v24 = vadd.f32 %v396_v23, %v395_v21 }
  0xf7   : > { %398 = vadd.xlane.f32.xlu1 %v397_v24 }
 0x182   : > { %v392_v27 = vpop.xlane.xlu0 %391 }
 0x183   : > { %v393_v28 = vsel %vm389_vm1, %v392_v27, 0.0 }
 0x184   : > { %394 = vst [vmem:[%s287_s12] sm:$0xff] %v393_v28  ;;  %v399_v29 = vpop.xlane.xlu1 %398 }
 0x185   : > { %v400_v30 = vsel %vm389_vm1, %v399_v29, 0.0 }
 0x186   : > { %401 = vst [vmem:[%s293_s15] sm:$0xff] %v400_v30 }
 0x187 PF: > { %s16_s20 = sadd.s32 1, %s630_s20   ;;  %s720_s18 = smov %s626_s19 }
 0x188   : > { %p13_p5 = scmp.ge.s32.totalorder %s16_s20, 4   ;;  %s721_s19 = smov %s723_s21 }
 0x18a   :  { %15 = sbr.rel (!%p13_p5) target bundleno = 2 (0x2), region = 86 }

// kernel: decoder_block_forward.5
= control target key start
LH: loop header
LB: loop body
LE: loop exit
PB: predicated region body
PF: predicated region fallthrough
CT: control target
= control target key end

     0   :  { %s1299_s24 = smov 0   ;;  %s1301_s25 = smov 0   ;;  %s1514_s0 = inlined_call_operand.vmem [shape: f32[2,32,256], index: 0, kind: input, shape index: {}]   ;;  %s1515_s1 = inlined_call_operand.vmem [shape: f32[32,1], index: 1, kind: input, shape index: {}]   ;;  %s1516_s2 = inlined_call_operand.vmem [shape: f32[32,1], index: 2, kind: input, shape index: {}]   ;;  %s1517_s3 = inlined_call_operand.vmem [shape: f32[16,8], index: 3, kind: input, shape index: {}]   ;;  %s1518_s4 = inlined_call_operand.vmem [shape: f32[16,1], index: 4, kind: input, shape index: {}]   ;;  %s1519_s5 = inlined_call_operand.vmem [shape: f32[2,64,256], index: 5, kind: output, shape index: {0}]   ;;  %s1520_s6 = inlined_call_operand.vmem [shape: f32[64,256], index: 6, kind: output, shape index: {1}]   ;;  %s1521_s7 = inlined_call_operand.vmem [shape: f32[64,256], index: 7, kind: output, shape index: {2}]  }
   0x1   :  { %s1303_s26 = smov 0   ;;  %s1305_s27 = smov 0  }
   0x2   :  { %s1307_s28 = smov 0  }
   0x3 LB: > { %s1146_s29 = sadd.s32 4294967295, %s1255_s28   ;;  %s30_s30 = sadd.s32 1, %s1251_s27  ;;  %s1255_s28 = sphi %s1307_s28, %s18_s28   ;;  %s1251_s27 = sphi %s1305_s27, %s1526_s27   ;;  %s1247_s26 = sphi %s1303_s26, %s1525_s26   ;;  %s1243_s25 = sphi %s1301_s25, %s1524_s25   ;;  %s1239_s24 = sphi %s1299_s24, %s1523_s24  }
   0x4   : > { %p32_p0 = scmp.ge.s32.totalorder %s30_s30, 2  ;;  %s179_s8 = sadd.s32 1, %s1243_s25 }
   0x5   : > { %p189_p1 = scmp.ne.s32.totalorder %s1243_s25, %s1239_s24  ;;  %p190_p2 = scmp.eq.s32.totalorder %s1146_s29, 1 }
   0x6   : > { %s1528_s30 = smov (%p32_p0, %s30_s30), 0  ;;  %p1150_p4 = scmp.ge.s32.totalorder %s1255_s28, 1 }
   0x7   : > { %p1331_p3 = por %p190_p2, %p189_p1  ;;  %s176_s10 = ssub.s32 %s1251_s27, %s1528_s30 }
   0x8   : > { %p267_p5 = scmp.lt.s32.totalorder %s1255_s28, 3  ;;  %p177_p6 = scmp.eq.s32.totalorder %s176_s10, 0 }
   0xa   : > { %p268_p7 = pnand %p1150_p4, %p267_p5 }
   0xb   : > { %s1340_s11 = scalar_select %p177_p6, %s1243_s25, %s179_s8  }
   0xc   : > { %271 = sbr.rel (%p268_p7) target bundleno = 552 (0x228), region = 40  ;;  %v377_v0 = vld [vmem:[%s1516_s2] sm:$0xff] (!%p268_p7)  ;;  %v1257_v2 = vmov (!%p268_p7), 0   ;;  %v378_v3 = vld [vmem:[%s1516_s2 + $0x8] sm:$0xff] (!%p268_p7)  ;;  %v348_v5 = vld [vmem:[%s1515_s1 + $0x18] sm:$0xff] (!%p268_p7)  ;;  %v1258_v7 = vmov (!%p268_p7), 0.0  }
   0xd   : > { %v345_v1 = vld [vmem:[%s1515_s1] sm:$0xff] (!%p268_p7)  ;;  %1216 = vset.pattern.permute.xlu1 (!%p268_p7), %v1257_v2  ;;  %1215 = vset.pattern.permute.xlu0 (!%p268_p7), %v1257_v2  ;;  %v346_v4 = vld [vmem:[%s1515_s1 + $0x8] sm:$0xff] (!%p268_p7)  ;;  %v347_v6 = vld [vmem:[%s1515_s1 + $0x10] sm:$0xff] (!%p268_p7)  ;;  %p316_p8 = scmp.lt.s32.totalorder (!%p268_p7), %s1247_s26, 1  ;;  %vm431_vm0 = vcmask (!%p268_p7), 64512   ;;  %s306_s15 = sand.u32 (!%p268_p7), 1, %s1239_s24  }
   0xe   : > { %383 = vperm.xlu1 (!%p268_p7), %1216, %v377_v0   ;;  %351 = vperm.xlu0 (!%p268_p7), %1215, %v345_v1   ;;  %v380_v8 = vld [vmem:[%s1516_s2 + $0x18] sm:$0xff] (!%p268_p7)  ;;  %v379_v9 = vld [vmem:[%s1516_s2 + $0x10] sm:$0xff] (!%p268_p7)  ;;  %v420_v10 = vld [vmem:[%s1518_s4 + $0x8] sm:$0xff] (!%p268_p7)  ;;  %s1151_s16 = sshll.u32 (!%p268_p7), %s306_s15, 6 }
   0xf   : > { %502 = vmatprep.mubr.f32.mxu0 (!%p268_p7), %v1258_v7  ;;  %579 = vmatprep.mubr.f32.mxu1 (!%p268_p7), %v1258_v7  ;;  %v419_v11 = vld [vmem:[%s1518_s4] sm:$0xff] (!%p268_p7)  ;;  %v418_v43 = vld [vmem:[%s1517_s3 + $0x8] sm:$0xff] (!%p268_p7) }
  0x10   : > { %v417_v28 = vld [vmem:[%s1517_s3] sm:$0xff] (!%p268_p7) }
  0x12   : > { %388 = vperm.xlu1 (!%p268_p7), %1216, %v378_v3   ;;  %356 = vperm.xlu0 (!%p268_p7), %1215, %v346_v4  }
  0x13   : > { %s1376_s17 = scalar_select %p316_p8, %s1247_s26, 1 }
  0x14   : > { %s1167_s24 = sshll.u32 (%p1331_p3), %s1247_s26, 3 }
  0x15   : > { %s1171_s18 = sshll.u32 %s1376_s17, 6  ;;  %s1172_s10 = sshll.u32 %s1376_s17, 7 }
  0x16   : > { %366 = vperm.xlu1 %1216, %v348_v5   ;;  %361 = vperm.xlu0 %1215, %v347_v6   ;;  %s323_s21 = scalar_lea.vmem %s1514_s0, %s1171_s18  ;;  %s1406_s14 = scalar_lea.vmem %s1519_s5, %s1172_s10 }
  0x17   : > { %v337_v12 = vld [vmem:[%s323_s21] sm:$0xff]  ;;  %v338_v13 = vld [vmem:[%s323_s21 + $0x8] sm:$0xff]  ;;  %v339_v18 = vld [vmem:[%s323_s21 + $0x10] sm:$0xff]  ;;  %s1436_s17 = scalar_lea.vmem [#allocation2], %s1151_s16  ;;  %s1440_s18 = scalar_lea.vmem [#allocation3], %s1151_s16 }
  0x18   : > { %v340_v19 = vld [vmem:[%s323_s21 + $0x18] sm:$0xff]  ;;  %v343_v29 = vld [vmem:[%s323_s21 + $0x30] sm:$0xff]  ;;  %v341_v35 = vld [vmem:[%s323_s21 + $0x20] sm:$0xff] }
  0x19   : > { %v344_v33 = vld [vmem:[%s323_s21 + $0x38] sm:$0xff]  ;;  %v342_v36 = vld [vmem:[%s323_s21 + $0x28] sm:$0xff]  ;;  %s887_s21 = scalar_lea.vmem (%p1331_p3), %s1520_s6, %s1167_s24 }
  0x1a   : > { %398 = vperm.xlu1 %1216, %v380_v8   ;;  %393 = vperm.xlu0 %1215, %v379_v9  }
  0x1e   : > { %428 = vperm.xlu1 %1216, %v420_v10   ;;  %423 = vperm.xlu0 %1215, %v419_v11  }
  0x8d   : > { %v384_v14 = vpop.permute.xlu1 %383  ;;  %v352_v15 = vpop.permute.xlu0 %351 }
  0x8e   : > { %v369_v16 = vmul.f32 %v352_v15, %v337_v12  ;;  %v370_v17 = vmul.f32 %v352_v15, %v338_v13 }
  0x90   : > { %v402_v20 = vadd.f32 %v384_v14, %v370_v17  ;;  %v401_v21 = vadd.f32 %v384_v14, %v369_v16 }
  0x91   : > { %v389_v22 = vpop.permute.xlu1 %388  ;;  %v357_v23 = vpop.permute.xlu0 %356 }
  0x92   : > { %v371_v24 = vmul.f32 %v357_v23, %v339_v18  ;;  %v372_v25 = vmul.f32 %v357_v23, %v340_v19  ;;  %v410_v26 = vmax.f32 %v402_v20, 0.0  ;;  %v409_v27 = vmax.f32 %v401_v21, 0.0 }
  0x94   : > { %438 = vmatprep.subr.mxu0 %v410_v26  ;;  %v404_v30 = vadd.f32 %v389_v22, %v372_v25  ;;  %v403_v31 = vadd.f32 %v389_v22, %v371_v24 }
  0x95   : > { %v367_v32 = vpop.permute.xlu1 %366  ;;  %v362_v34 = vpop.permute.xlu0 %361  ;;  %439 = vmatpush1.msra.mxu0 %v409_v27 }
  0x96   : > { %1157 = vmatmul.mubr.msk.f32.vlgmr.msra.gmra.mrb[0].mxu0 %vm431_vm0, %v417_v28  ;;  %v412_v37 = vmax.f32 %v404_v30, 0.0  ;;  %v411_v38 = vmax.f32 %v403_v31, 0.0  ;;  %v375_v39 = vmul.f32 %v367_v32, %v343_v29  ;;  %v376_v40 = vmul.f32 %v367_v32, %v344_v33 }
  0x97   : > { %508 = vmatprep.mubr.f32.mxu0 %v1258_v7  ;;  %v373_v41 = vmul.f32 %v362_v34, %v341_v35  ;;  %v374_v42 = vmul.f32 %v362_v34, %v342_v36 }
  0x98   : > { %515 = vmatprep.subr.mxu1 %v412_v37 }
  0x99   : > { %v399_v44 = vpop.permute.xlu1 %398  ;;  %v394_v45 = vpop.permute.xlu0 %393  ;;  %516 = vmatpush1.msra.mxu1 %v411_v38 }
  0x9a   : > { %v407_v46 = vadd.f32 %v399_v44, %v375_v39  ;;  %v408_v47 = vadd.f32 %v399_v44, %v376_v40  ;;  %v405_v48 = vadd.f32 %v394_v45, %v373_v41  ;;  %v406_v49 = vadd.f32 %v394_v45, %v374_v42  ;;  %1158 = vmatmul.mubr.msk.f32.gmra.mrb[2].mxu0 %vm431_vm0, %v418_v43 }
  0x9b   : > { %1159 = vmatmul.mubr.msk.f32.vlgmr.msra.gmra.mrb[0].mxu1 %vm431_vm0, %v417_v28  ;;  %656 = vmatprep.mubr.f32.mxu0 %v1258_v7 }
  0x9c   : > { %v415_v50 = vmax.f32 %v407_v46, 0.0  ;;  %v416_v51 = vmax.f32 %v408_v47, 0.0  ;;  %v413_v52 = vmax.f32 %v405_v48, 0.0  ;;  %v414_v53 = vmax.f32 %v406_v49, 0.0  ;;  %585 = vmatprep.mubr.f32.mxu1 %v1258_v7 }
  0x9d   : > { %v424_v54 = vpop.permute.xlu0 %423  ;;  %v1409_v60 = vpop.permute.xlu1 %428 }
  0x9e   : > { %592 = vmatprep.subr.mxu0 %v414_v53  ;;  %669 = vmatprep.subr.mxu1 %v416_v51 }
  0x9f   : > { %1160 = vmatmul.mubr.msk.f32.gmra.mrb[2].mxu1 %vm431_vm0, %v418_v43  ;;  %593 = vmatpush1.msra.mxu0 %v413_v52 }
  0xa0   : > { %670 = vmatpush1.msra.mxu1 %v415_v50  ;;  %1161 = vmatmul.mubr.msk.f32.vlgmr.msra.gmra.mrb[4].mxu0 %vm431_vm0, %v417_v28 }
  0xa1   : > { %733 = vmatprep.mubr.f32.mxu1 %v1258_v7  ;;  %662 = vmatprep.mubr.f32.mxu0 %v1258_v7 }
  0xa3   : > { %1163 = vmatmul.mubr.msk.f32.vlgmr.msra.gmra.mrb[4].mxu1 %vm431_vm0, %v417_v28 }
  0xa4   : > { %1162 = vmatmul.mubr.msk.f32.gmra.mrb[6].mxu0 %vm431_vm0, %v418_v43  ;;  %739 = vmatprep.mubr.f32.mxu1 %v1258_v7 }
  0xa7   : > { %1164 = vmatmul.mubr.msk.f32.gmra.mrb[6].mxu1 %vm431_vm0, %v418_v43 }
 0x169   : > { %v504_v55 = vpop.f32.mrb[0].mxu0 }
 0x16a   : > { %v505_v56 = vadd.f32 %v504_v55, %v424_v54  ;;  %v506_v57 = vpop.f32.mrb[1].mxu0 }
 0x16b   : > { %v507_v58 = vadd.f32 %v506_v57, %v424_v54 }
 0x16c   : > { %746 = vst [vmem:[%s1406_s14] sm:$0xff] %v505_v56  ;;  %v805_v59 = vmul.f32 %v505_v56, %v505_v56 }
 0x16d   : > { %747 = vst [vmem:[%s1406_s14 + $0x8] sm:$0xff] %v507_v58  ;;  %v765_v61 = vadd.f32 %v507_v58, %v505_v56  ;;  %v806_v62 = vmul.f32 %v507_v58, %v507_v58  ;;  %v510_v63 = vpop.f32.mrb[2].mxu0  ;;  %v762_v56 = vlaneseq }
 0x16e   : > { %v581_v0 = vpop.f32.mrb[0].mxu1  ;;  %v511_v1 = vadd.f32 %v510_v63, %v1409_v60  ;;  %v512_v3 = vpop.f32.mrb[3].mxu0 }
 0x16f   : > { %v582_v2 = vadd.f32 %v581_v0, %v424_v54  ;;  %v583_v4 = vpop.f32.mrb[1].mxu1  ;;  %766 = vadd.xlane.f32.xlu0 %v765_v61  ;;  %v821_v5 = vadd.f32 %v806_v62, %v805_v59  ;;  %v513_v6 = vadd.f32 %v512_v3, %v1409_v60  ;;  %v763_v57 = vand.u32 127, %v762_v56 }
 0x170   : > { %v584_v7 = vadd.f32 %v583_v4, %v424_v54  ;;  %748 = vst [vmem:[%s1406_s14 + $0x10] sm:$0xff] %v511_v1  ;;  %v807_v9 = vmul.f32 %v511_v1, %v511_v1 }
 0x171   : > { %750 = vst [vmem:[%s1406_s14 + $0x20] sm:$0xff] %v582_v2  ;;  %822 = vadd.xlane.f32.xlu1 %v821_v5  ;;  %v809_v8 = vmul.f32 %v582_v2, %v582_v2  ;;  %749 = vst [vmem:[%s1406_s14 + $0x18] sm:$0xff] %v513_v6  ;;  %v768_v13 = vadd.f32 %v513_v6, %v511_v1  ;;  %v808_v14 = vmul.f32 %v513_v6, %v513_v6 }
 0x172   : > { %751 = vst [vmem:[%s1406_s14 + $0x28] sm:$0xff] %v584_v7  ;;  %v587_v10 = vpop.f32.mrb[2].mxu1  ;;  %v771_v11 = vadd.f32 %v584_v7, %v582_v2  ;;  %v810_v12 = vmul.f32 %v584_v7, %v584_v7  ;;  %vm764_vm1 = vcmp.eq.s32.totalorder %v763_v57, 0 }
 0x173   : > { %v588_v15 = vadd.f32 %v587_v10, %v1409_v60  ;;  %v589_v16 = vpop.f32.mrb[3].mxu1  ;;  %v658_v17 = vpop.f32.mrb[4].mxu0  ;;  %v824_v22 = vadd.f32 %v808_v14, %v807_v9 }
 0x174   : > { %v590_v18 = vadd.f32 %v589_v16, %v1409_v60  ;;  %v659_v19 = vadd.f32 %v658_v17, %v424_v54  ;;  %772 = vadd.xlane.f32.xlu0 %v771_v11  ;;  %v660_v20 = vpop.f32.mrb[5].mxu0  ;;  %v827_v21 = vadd.f32 %v810_v12, %v809_v8 }
 0x175   : > { %752 = vst [vmem:[%s1406_s14 + $0x30] sm:$0xff] %v588_v15  ;;  %v661_v23 = vadd.f32 %v660_v20, %v424_v54  ;;  %v811_v24 = vmul.f32 %v588_v15, %v588_v15 }
 0x176   : > { %753 = vst [vmem:[%s1406_s14 + $0x38] sm:$0xff] %v590_v18  ;;  %754 = vst [vmem:[%s1406_s14 + $0x40] sm:$0xff] %v659_v19  ;;  %v735_v25 = vpop.f32.mrb[4].mxu1  ;;  %828 = vadd.xlane.f32.xlu1 %v827_v21  ;;  %v774_v26 = vadd.f32 %v590_v18, %v588_v15  ;;  %v812_v27 = vmul.f32 %v590_v18, %v590_v18  ;;  %v813_v28 = vmul.f32 %v659_v19, %v659_v19 }
 0x177   : > { %755 = vst [vmem:[%s1406_s14 + $0x48] sm:$0xff] %v661_v23  ;;  %v736_v29 = vadd.f32 %v735_v25, %v424_v54  ;;  %v737_v30 = vpop.f32.mrb[5].mxu1  ;;  %v664_v31 = vpop.f32.mrb[6].mxu0  ;;  %v777_v32 = vadd.f32 %v661_v23, %v659_v19  ;;  %v814_v33 = vmul.f32 %v661_v23, %v661_v23 }
 0x178   : > { %v738_v34 = vadd.f32 %v737_v30, %v424_v54  ;;  %v665_v35 = vadd.f32 %v664_v31, %v1409_v60  ;;  %775 = vadd.xlane.f32.xlu0 %v774_v26  ;;  %v666_v36 = vpop.f32.mrb[7].mxu0  ;;  %v830_v37 = vadd.f32 %v812_v27, %v811_v24 }
 0x179   : > { %758 = vst [vmem:[%s1406_s14 + $0x60] sm:$0xff] %v736_v29  ;;  %v667_v38 = vadd.f32 %v666_v36, %v1409_v60  ;;  %v833_v39 = vadd.f32 %v814_v33, %v813_v28  ;;  %v817_v40 = vmul.f32 %v736_v29, %v736_v29 }
 0x17a   : > { %759 = vst [vmem:[%s1406_s14 + $0x68] sm:$0xff] %v738_v34  ;;  %756 = vst [vmem:[%s1406_s14 + $0x50] sm:$0xff] %v665_v35  ;;  %v741_v41 = vpop.f32.mrb[6].mxu1  ;;  %769 = vadd.xlane.f32.xlu1 %v768_v13  ;;  %v783_v42 = vadd.f32 %v738_v34, %v736_v29  ;;  %v818_v43 = vmul.f32 %v738_v34, %v738_v34  ;;  %v815_v44 = vmul.f32 %v665_v35, %v665_v35 }
 0x17b   : > { %757 = vst [vmem:[%s1406_s14 + $0x58] sm:$0xff] %v667_v38  ;;  %v742_v45 = vadd.f32 %v741_v41, %v1409_v60  ;;  %v743_v46 = vpop.f32.mrb[7].mxu1  ;;  %v780_v47 = vadd.f32 %v667_v38, %v665_v35  ;;  %v816_v48 = vmul.f32 %v667_v38, %v667_v38 }
 0x17c   : > { %v744_v49 = vadd.f32 %v743_v46, %v1409_v60  ;;  %825 = vadd.xlane.f32.xlu0 %v824_v22  ;;  %v839_v50 = vadd.f32 %v818_v43, %v817_v40 }
 0x17d   : > { %760 = vst [vmem:[%s1406_s14 + $0x70] sm:$0xff] %v742_v45  ;;  %v836_v51 = vadd.f32 %v816_v48, %v815_v44  ;;  %v819_v52 = vmul.f32 %v742_v45, %v742_v45 }
 0x17e   : > { %761 = vst [vmem:[%s1406_s14 + $0x78] sm:$0xff] %v744_v49  ;;  %778 = vadd.xlane.f32.xlu1 %v777_v32  ;;  %v786_v53 = vadd.f32 %v744_v49, %v742_v45  ;;  %v820_v54 = vmul.f32 %v744_v49, %v744_v49 }
 0x180   : > { %831 = vadd.xlane.f32.xlu0 %v830_v37  ;;  %v842_v55 = vadd.f32 %v820_v54, %v819_v52 }
 0x182   : > { %784 = vadd.xlane.f32.xlu1 %v783_v42 }
 0x184   : > { %781 = vadd.xlane.f32.xlu0 %v780_v47 }
 0x186   : > { %834 = vadd.xlane.f32.xlu1 %v833_v39 }
 0x188   : > { %787 = vadd.xlane.f32.xlu0 %v786_v53 }
 0x18a   : > { %840 = vadd.xlane.f32.xlu1 %v839_v50 }
 0x18c   : > { %837 = vadd.xlane.f32.xlu0 %v836_v51 }
 0x190   : > { %843 = vadd.xlane.f32.xlu0 %v842_v55 }
 0x1fc   : > { %v767_v58 = vpop.xlane.xlu0 %766 }
 0x1fd   : > { %v789_v59 = vsel %vm764_vm1, %v767_v58, 0.0 }
 0x1fe   : > { %797 = vst [vmem:[%s1436_s17] sm:$0xff] %v789_v59  ;;  %v823_v60 = vpop.xlane.xlu1 %822 }
 0x1ff   : > { %v845_v61 = vsel %vm764_vm1, %v823_v60, 0.0 }
 0x200   : > { %853 = vst [vmem:[%s1440_s18] sm:$0xff] %v845_v61 }
 0x201   : > { %v773_v62 = vpop.xlane.xlu0 %772 }
 0x202   : > { %v791_v63 = vsel %vm764_vm1, %v773_v62, 0.0 }
 0x203   : > { %799 = vst [vmem:[%s1436_s17 + $0x10] sm:$0xff] %v791_v63  ;;  %v829_v0 = vpop.xlane.xlu1 %828 }
 0x204   : > { %v847_v1 = vsel %vm764_vm1, %v829_v0, 0.0 }
 0x205   : > { %855 = vst [vmem:[%s1440_s18 + $0x10] sm:$0xff] %v847_v1  ;;  %v776_v2 = vpop.xlane.xlu0 %775  ;;  %v929_v26 = vld [vmem:[%s1436_s17] sm:$0xff] (%p1331_p3) }
 0x206   : > { %v792_v3 = vsel %vm764_vm1, %v776_v2, 0.0  ;;  %930 = vst [vmem:[%s887_s21] sm:$0xff] (%p1331_p3), %v929_v26 }
 0x207   : > { %800 = vst [vmem:[%s1436_s17 + $0x18] sm:$0xff] %v792_v3  ;;  %v770_v4 = vpop.xlane.xlu1 %769 }
 0x208   : > { %v790_v5 = vsel %vm764_vm1, %v770_v4, 0.0 }
 0x209   : > { %798 = vst [vmem:[%s1436_s17 + $0x8] sm:$0xff] %v790_v5  ;;  %v826_v6 = vpop.xlane.xlu0 %825 }
 0x20a   : > { %v846_v7 = vsel %vm764_vm1, %v826_v6, 0.0  ;;  %v933_v28 = vld [vmem:[%s1436_s17 + $0x10] sm:$0xff] (%p1331_p3) }
 0x20b   : > { %854 = vst [vmem:[%s1440_s18 + $0x8] sm:$0xff] %v846_v7  ;;  %v779_v8 = vpop.xlane.xlu1 %778  ;;  %934 = vst [vmem:[%s887_s21 + $0x20] sm:$0xff] (%p1331_p3), %v933_v28 }
 0x20c   : > { %v793_v9 = vsel %vm764_vm1, %v779_v8, 0.0 }
 0x20d   : > { %801 = vst [vmem:[%s1436_s17 + $0x20] sm:$0xff] %v793_v9  ;;  %v832_v10 = vpop.xlane.xlu0 %831 }
 0x20e   : > { %v848_v11 = vsel %vm764_vm1, %v832_v10, 0.0  ;;  %v935_v29 = vld [vmem:[%s1436_s17 + $0x18] sm:$0xff] (%p1331_p3) }
 0x20f   : > { %856 = vst [vmem:[%s1440_s18 + $0x18] sm:$0xff] %v848_v11  ;;  %v785_v12 = vpop.xlane.xlu1 %784  ;;  %936 = vst [vmem:[%s887_s21 + $0x30] sm:$0xff] (%p1331_p3), %v935_v29 }
 0x210   : > { %v795_v13 = vsel %vm764_vm1, %v785_v12, 0.0  ;;  %v931_v27 = vld [vmem:[%s1436_s17 + $0x8] sm:$0xff] (%p1331_p3) }
 0x211   : > { %803 = vst [vmem:[%s1436_s17 + $0x30] sm:$0xff] %v795_v13  ;;  %v782_v14 = vpop.xlane.xlu0 %781  ;;  %932 = vst [vmem:[%s887_s21 + $0x10] sm:$0xff] (%p1331_p3), %v931_v27 }
 0x212   : > { %v794_v15 = vsel %vm764_vm1, %v782_v14, 0.0 }
 0x213   : > { %802 = vst [vmem:[%s1436_s17 + $0x28] sm:$0xff] %v794_v15  ;;  %v835_v16 = vpop.xlane.xlu1 %834 }
 0x214   : > { %v849_v17 = vsel %vm764_vm1, %v835_v16, 0.0  ;;  %v937_v30 = vld [vmem:[%s1436_s17 + $0x20] sm:$0xff] (%p1331_p3) }
 0x215   : > { %857 = vst [vmem:[%s1440_s18 + $0x20] sm:$0xff] %v849_v17  ;;  %v788_v18 = vpop.xlane.xlu0 %787  ;;  %938 = vst [vmem:[%s887_s21 + $0x40] sm:$0xff] (%p1331_p3), %v937_v30 }
 0x216   : > { %v796_v19 = vsel %vm764_vm1, %v788_v18, 0.0 }
 0x217   : > { %804 = vst [vmem:[%s1436_s17 + $0x38] sm:$0xff] %v796_v19  ;;  %v841_v20 = vpop.xlane.xlu1 %840 }
 0x218   : > { %v851_v21 = vsel %vm764_vm1, %v841_v20, 0.0  ;;  %v941_v32 = vld [vmem:[%s1436_s17 + $0x30] sm:$0xff] (%p1331_p3) }
 0x219   : > { %859 = vst [vmem:[%s1440_s18 + $0x30] sm:$0xff] %v851_v21  ;;  %v838_v22 = vpop.xlane.xlu0 %837  ;;  %884 = sbr.rel (!%p1331_p3) target bundleno = 544 (0x220), region = 48  ;;  %942 = vst [vmem:[%s887_s21 + $0x60] sm:$0xff] (%p1331_p3), %v941_v32 }
 0x21a   : > { %v850_v23 = vsel %vm764_vm1, %v838_v22, 0.0  ;;  %v939_v31 = vld [vmem:[%s1436_s17 + $0x28] sm:$0xff] (%p1331_p3) }
 0x21b   : > { %858 = vst [vmem:[%s1440_s18 + $0x28] sm:$0xff] %v850_v23  ;;  %940 = vst [vmem:[%s887_s21 + $0x50] sm:$0xff] (%p1331_p3), %v939_v31 }
 0x21d   : > { %v844_v24 = vpop.xlane.xlu0 %843 }
 0x21e   : > { %v852_v25 = vsel %vm764_vm1, %v844_v24, 0.0  ;;  %v943_v33 = vld [vmem:[%s1436_s17 + $0x38] sm:$0xff] (%p1331_p3) }
 0x21f   : > { %860 = vst [vmem:[%s1440_s18 + $0x38] sm:$0xff] %v852_v25  ;;  %944 = vst [vmem:[%s887_s21 + $0x70] sm:$0xff] (%p1331_p3), %v943_v33 }
 0x220 PF: > { %950 = sbr.rel (!%p1331_p3) target bundleno = 552 (0x228), region = 86  ;;  %s1168_s22 = sshll.u32 (%p1331_p3), %s1247_s26, 3  ;;  %v995_v34 = vld [vmem:[%s1440_s18] sm:$0xff] (%p1331_p3)  ;;  %v997_v35 = vld [vmem:[%s1440_s18 + $0x8] sm:$0xff] (%p1331_p3)  ;;  %v999_v36 = vld [vmem:[%s1440_s18 + $0x10] sm:$0xff] (%p1331_p3) }
 0x221   : > { %s953_s8 = scalar_lea.vmem (%p1331_p3), %s1521_s7, %s1168_s22  ;;  %v1001_v37 = vld [vmem:[%s1440_s18 + $0x18] sm:$0xff] (%p1331_p3)  ;;  %v1003_v38 = vld [vmem:[%s1440_s18 + $0x20] sm:$0xff] (%p1331_p3)  ;;  %v1007_v40 = vld [vmem:[%s1440_s18 + $0x30] sm:$0xff] (%p1331_p3) }
 0x222   : > { %v1005_v39 = vld [vmem:[%s1440_s18 + $0x28] sm:$0xff] (%p1331_p3)  ;;  %996 = vst [vmem:[%s953_s8] sm:$0xff] (%p1331_p3), %v995_v34  ;;  %998 = vst [vmem:[%s953_s8 + $0x10] sm:$0xff] (%p1331_p3), %v997_v35 }
 0x223   : > { %1000 = vst [vmem:[%s953_s8 + $0x20] sm:$0xff] (%p1331_p3), %v999_v36  ;;  %1002 = vst [vmem:[%s953_s8 + $0x30] sm:$0xff] (%p1331_p3), %v1001_v37 }
 0x224   : > { %1004 = vst [vmem:[%s953_s8 + $0x40] sm:$0xff] (%p1331_p3), %v1003_v38  ;;  %1006 = vst [vmem:[%s953_s8 + $0x50] sm:$0xff] (%p1331_p3), %v1005_v39 }
 0x225   : > { %1008 = vst [vmem:[%s953_s8 + $0x60] sm:$0xff] (%p1331_p3), %v1007_v40 }
 0x226   : > { %v1009_v41 = vld [vmem:[%s1440_s18 + $0x38] sm:$0xff] (%p1331_p3) }
 0x227   : > { %1010 = vst [vmem:[%s953_s8 + $0x70] sm:$0xff] %v1009_v41 }
 0x228 PF: > { %s18_s28 = sadd.s32 1, %s1255_s28   ;;  %s1523_s24 = smov %s1243_s25 }
 0x229   : > { %p15_p9 = scmp.ge.s32.totalorder %s18_s28, 4   ;;  %s1524_s25 = smov %s1340_s11 }
 0x22a   : > { %s1525_s26 = smov %s1251_s27  ;;  %s1526_s27 = smov %s1528_s30 }
 0x22b   :  { %17 = sbr.rel (!%p15_p9) target bundleno = 3 (0x3), region = 170 }

// kernel: decoder_block_forward.4
= control target key start
LH: loop header
LB: loop body
LE: loop exit
PB: predicated region body
PF: predicated region fallthrough
CT: control target
= control target key end

     0   :  { %s1157_s27 = smov 0   ;;  %s1159_s28 = smov 0   ;;  %s1341_s0 = inlined_call_operand.vmem [shape: f32[2,8,256], index: 0, kind: input, shape index: {}, may-alias: {0,1}]   ;;  %s1342_s1 = inlined_call_operand.vmem [shape: f32[2,8,256], index: 1, kind: input, shape index: {}, may-alias: {0,1}]   ;;  %s1343_s2 = inlined_call_operand.vmem [shape: f32[8,1], index: 2, kind: input, shape index: {}]   ;;  %s1344_s3 = inlined_call_operand.vmem [shape: f32[8,1], index: 3, kind: input, shape index: {}]   ;;  %s1345_s4 = inlined_call_operand.vmem [shape: f32[32,32], index: 4, kind: input, shape index: {}]   ;;  %s1346_s5 = inlined_call_operand.vmem [shape: f32[32,1], index: 5, kind: input, shape index: {}]   ;;  %s1347_s6 = inlined_call_operand.vmem [shape: f32[2,32,256], index: 6, kind: output, shape index: {0}]   ;;  %s1348_s7 = inlined_call_operand.vmem [shape: f32[32,256], index: 7, kind: output, shape index: {1}]   ;;  %s1349_s8 = inlined_call_operand.vmem [shape: f32[32,256], index: 8, kind: output, shape index: {2}]  }
   0x1   :  { %s1161_s29 = smov 0   ;;  %s1163_s30 = smov 0  }
   0x2   :  { %s1165_s9 = smov 0  }
   0x3 LB: > { %s980_s10 = sadd.s32 4294967295, %s1106_s9   ;;  %s31_s11 = sadd.s32 1, %s1102_s30  ;;  %s1106_s9 = sphi %s1165_s9, %s19_s9   ;;  %s1102_s30 = sphi %s1163_s30, %s1354_s30   ;;  %s1098_s29 = sphi %s1161_s29, %s1353_s29   ;;  %s1094_s28 = sphi %s1159_s28, %s1352_s28   ;;  %s1090_s27 = sphi %s1157_s27, %s1351_s27  }
   0x4   : > { %p33_p0 = scmp.ge.s32.totalorder %s31_s11, 2  ;;  %s216_s12 = sadd.s32 1, %s1094_s28 }
   0x5   : > { %p226_p1 = scmp.ne.s32.totalorder %s1094_s28, %s1090_s27  ;;  %p227_p2 = scmp.eq.s32.totalorder %s980_s10, 1 }
   0x6   : > { %s1356_s11 = smov (%p33_p0, %s31_s11), 0  ;;  %p984_p4 = scmp.ge.s32.totalorder %s1106_s9, 1 }
   0x7   : > { %p1189_p3 = por %p227_p2, %p226_p1  ;;  %s213_s14 = ssub.s32 %s1102_s30, %s1356_s11 }
   0x8   : > { %p323_p5 = scmp.lt.s32.totalorder %s1106_s9, 3  ;;  %p214_p6 = scmp.eq.s32.totalorder %s213_s14, 0 }
   0xa   : > { %p324_p7 = pnand %p984_p4, %p323_p5 }
   0xb   : > { %s1198_s15 = scalar_select %p214_p6, %s1094_s28, %s216_s12  }
   0xc   : > { %327 = sbr.rel (%p324_p7) target bundleno = 782 (0x30e), region = 44  ;;  %v423_v0 = vld [vmem:[%s1343_s2] sm:$0xff] (!%p324_p7)  ;;  %v1108_v1 = vmov (!%p324_p7), 0   ;;  %v1109_v3 = vmov (!%p324_p7), 0.0   ;;  %s1110_s20 = smov (!%p324_p7), 112   ;;  %v455_v19 = vlaneseq (!%p324_p7)  ;;  %v528_v41 = vld [vmem:[%s1346_s5 + $0x10] sm:$0xff] (!%p324_p7) }
   0xd   : > { %1066 = vset.pattern.permute.xlu0 (!%p324_p7), %v1108_v1  ;;  %1067 = vset.pattern.permute.xlu1 (!%p324_p7), %v1108_v1  ;;  %v424_v2 = vld [vmem:[%s1344_s3] sm:$0xff] (!%p324_p7)  ;;  %p386_p8 = scmp.lt.s32.totalorder (!%p324_p7), %s1098_s29, 1  ;;  %s1111_s16 = smov (!%p324_p7), 127   ;;  %v527_v44 = vld [vmem:[%s1346_s5 + $0x8] sm:$0xff] (!%p324_p7)  ;;  %v529_v45 = vld [vmem:[%s1346_s5 + $0x18] sm:$0xff] (!%p324_p7)  ;;  %vm550_vm5 = vcmask (!%p324_p7), 261120  }
   0xe   : > { %429 = vperm.xlu0 (!%p324_p7), %1066, %v423_v0   ;;  %453 = vrot.lane.b32.xlu1 (!%p324_p7), %v1109_v3, %s1110_s20  ;;  %v1220_v21 = vand.u32 (!%p324_p7), 127, %v455_v19  ;;  %v526_v34 = vld [vmem:[%s1346_s5] sm:$0xff] (!%p324_p7)  ;;  %v524_v55 = vld [vmem:[%s1345_s4 + $0x10] sm:$0xff] (!%p324_p7)  ;;  %v523_v56 = vld [vmem:[%s1345_s4 + $0x8] sm:$0xff] (!%p324_p7) }
   0xf   : > { %627 = vmatprep.mubr.f32.mxu0 (!%p324_p7), %v1109_v3  ;;  %639 = vmatprep.mubr.f32.mxu1 (!%p324_p7), %v1109_v3  ;;  %v522_v54 = vld [vmem:[%s1345_s4] sm:$0xff] (!%p324_p7)  ;;  %v525_v57 = vld [vmem:[%s1345_s4 + $0x18] sm:$0xff] (!%p324_p7) }
  0x10   : > { %v460_v22 = vadd.s32 (!%p324_p7), 128, %v1220_v21  ;;  %v465_v24 = vand.u32 (!%p324_p7), 15, %v1220_v21  ;;  %vm457_vm0 = vcmp.lt.s32.totalorder (!%p324_p7), %v1220_v21, 112  ;;  %vm497_vm4 = vcmp.lt.s32.totalorder (!%p324_p7), %v1220_v21, 127 }
  0x11   : > { %vm660_vm6 = vcmp.eq.s32.totalorder (!%p324_p7), %v1220_v21, 0 }
  0x12   : > { %436 = vperm.xlu0 (!%p324_p7), %1066, %v424_v2   ;;  %v472_v25 = vand.u32 (!%p324_p7), 15, %v460_v22  ;;  %vm492_vm1 = vcmp.ge.s32.totalorder (!%p324_p7), %v460_v22, 240  ;;  %vm485_vm2 = vcmp.ne.s32.totalorder (!%p324_p7), %v465_v24, 15 }
  0x13   : > { %s1211_s21 = scalar_select %p386_p8, %s1098_s29, 1  ;;  %v993_v32 = vsel %vm485_vm2, 1.0, %v1109_v3 }
  0x14   : > { %vm486_vm3 = vcmp.ne.s32.totalorder %v472_v25, 15 }
  0x15   : > { %s1005_s22 = sshll.u32 %s1211_s21, 4  ;;  %v994_v33 = vsel %vm486_vm3, 1.0, %v1109_v3 }
  0x16   : > { %s1007_s23 = sadd.s32 8, %s1005_s22  ;;  %s393_s26 = scalar_lea.vmem %s1341_s0, %s1005_s22 }
  0x17   : > { %s406_s14 = scalar_lea.vmem %s1342_s1, %s1007_s23  ;;  %v425_v5 = vld [vmem:[%s393_s26] sm:$0xff]  ;;  %v426_v9 = vld [vmem:[%s393_s26 + $0x8] sm:$0xff] }
  0x18   : > { %v443_v6 = vld [vmem:[%s406_s14] sm:$0xff] }
  0x80   : > { %v454_v20 = vpop.permute.xlu1 %453 }
  0x8d   : > { %v430_v4 = vpop.permute.xlu0 %429 }
  0x8e   : > { %v432_v7 = vmul.f32 %v430_v4, %v425_v5  ;;  %v444_v8 = vmul.f32 %v443_v6, %v430_v4  ;;  %v433_v13 = vmul.f32 %v430_v4, %v426_v9 }
  0x91   : > { %v437_v10 = vpop.permute.xlu0 %436 }
  0x92   : > { %v439_v11 = vadd.f32 %v437_v10, %v432_v7  ;;  %v445_v12 = vadd.f32 %v444_v8, %v437_v10  ;;  %v440_v16 = vadd.f32 %v437_v10, %v433_v13 }
  0x94   : > { %v446_v14 = vmax.f32 %v445_v12, 0.0  ;;  %v441_v15 = vmax.f32 %v439_v11, 0.0  ;;  %v442_v18 = vmax.f32 %v440_v16, 0.0 }
  0x96   : > { %502 = vrot.lane.b32.xlu0 %v441_v15, %s1110_s20  ;;  %v450_v17 = vmul.f32 0.0, %v446_v14 }
  0x98   : > { %451 = vrot.lane.b32.xlu1 %v450_v17, %s1110_s20 }
  0x9a   : > { %493 = vrot.lane.b32.xlu0 %v441_v15, %s1111_s16 }
  0x9c   : > { %504 = vrot.lane.b32.xlu1 %v442_v18, %s1110_s20  ;;  %s1008_s20 = sshll.u32 %s1211_s21, 6  ;;  %s376_s21 = sand.u32 1, %s1090_s27  }
  0x9d   : > { %s1266_s24 = scalar_lea.vmem %s1347_s6, %s1008_s20  ;;  %s985_s25 = sshll.u32 %s376_s21, 5 }
  0x9e   : > { %s1280_s26 = scalar_lea.vmem [#allocation2], %s985_s25  ;;  %s1285_s10 = scalar_lea.vmem [#allocation3], %s985_s25 }
  0x9f   : > { %s1001_s27 = sshll.u32 (%p1189_p3), %s1098_s29, 3 }
  0xa0   : > { %495 = vrot.lane.b32.xlu1 %v442_v18, %s1111_s16 }
 0x108   : > { %v503_v26 = vpop.permute.xlu0 %502 }
 0x10a   : > { %v452_v23 = vpop.permute.xlu1 %451 }
 0x10b   : > { %v459_v28 = vsel %vm457_vm0, %v454_v20, %v452_v23 }
 0x10c   : > { %v494_v35 = vpop.permute.xlu0 %493 }
 0x10e   : > { %v505_v27 = vpop.permute.xlu1 %504 }
 0x10f   : > { %v507_v29 = vsel %vm457_vm0, %v505_v27, %v503_v26  ;;  %v506_v30 = vsel %vm457_vm0, %v503_v26, %v505_v27 }
 0x110   : > { %514 = vrot.lane.b32.xlu0 %v506_v30, %s1111_s16  ;;  %v513_v31 = vsel %vm492_vm1, %v459_v28, %v507_v29 }
 0x111   : > { %516 = vrot.lane.b32.xlu1 %v513_v31, %s1111_s16  ;;  %s735_s16 = scalar_lea.vmem (%p1189_p3), %s1348_s7, %s1001_s27 }
 0x112   : > { %v496_v36 = vpop.permute.xlu1 %495 }
 0x113   : > { %v498_v37 = vsel %vm497_vm4, %v494_v35, %v496_v36  ;;  %v499_v38 = vsel %vm497_vm4, %v496_v36, %v494_v35 }
 0x114   : > { %v500_v39 = vmul.f32 %v993_v32, %v498_v37  ;;  %v501_v40 = vmul.f32 %v994_v33, %v499_v38  ;;  %532 = vperm.xlu0 %1066, %v526_v34  }
 0x115   : > { %537 = vperm.xlu1 %1067, %v527_v44  }
 0x116   : > { %v1010_v42 = vpack.c.bf16 %v501_v40, %v442_v18  ;;  %v1012_v43 = vpack.c.bf16 %v500_v39, %v441_v15 }
 0x118   : > { %542 = vperm.xlu0 %1066, %v528_v41   ;;  %1011 = vmatprep.subr.bf16.mxu0 %v1010_v42 }
 0x119   : > { %1018 = vmatprep.subr.bf16.mxu1 %v1010_v42  ;;  %1013 = vmatpush1.bf16.msra.mxu0 %v1012_v43 }
 0x11a   : > { %1020 = vmatpush1.bf16.msra.mxu1 %v1012_v43  ;;  %547 = vperm.xlu1 %1067, %v529_v45  }
 0x182   : > { %v515_v46 = vpop.permute.xlu0 %514 }
 0x183   : > { %v517_v47 = vpop.permute.xlu1 %516 }
 0x184   : > { %v518_v48 = vsel %vm497_vm4, %v515_v46, %v517_v47  ;;  %v519_v49 = vsel %vm497_vm4, %v517_v47, %v515_v46 }
 0x185   : > { %v520_v50 = vmul.f32 %v993_v32, %v518_v48  ;;  %v521_v51 = vmul.f32 %v994_v33, %v519_v49 }
 0x187   : > { %v1014_v52 = vpack.c.bf16 %v521_v51, %v513_v31  ;;  %v1016_v53 = vpack.c.bf16 %v520_v50, %v506_v30 }
 0x189   : > { %1015 = vmatprep.subr.bf16.mxu0 %v1014_v52  ;;  %1019 = vmatprep.subr.bf16.mxu1 %v1014_v52 }
 0x18a   : > { %1017 = vmatpush1.bf16.msra.mxu0 %v1016_v53  ;;  %1021 = vmatpush1.bf16.msra.mxu1 %v1016_v53 }
 0x18d   : > { %995 = vmatmul.mubr.msk.f32.vlgmr.msra.gmra.mrb[0].mxu0 %vm550_vm5, %v522_v54  ;;  %997 = vmatmul.mubr.msk.f32.vlgmr.msra.gmra.mrb[0].mxu1 %vm550_vm5, %v524_v55 }
 0x18e   : > { %633 = vmatprep.mubr.f32.mxu0 %v1109_v3  ;;  %645 = vmatprep.mubr.f32.mxu1 %v1109_v3 }
 0x191   : > { %996 = vmatmul.mubr.msk.f32.gmra.mrb[2].mxu0 %vm550_vm5, %v523_v56  ;;  %998 = vmatmul.mubr.msk.f32.gmra.mrb[2].mxu1 %vm550_vm5, %v525_v57 }
 0x193   : > { %v533_v58 = vpop.permute.xlu0 %532 }
 0x194   : > { %v538_v59 = vpop.permute.xlu1 %537 }
 0x197   : > { %v543_v60 = vpop.permute.xlu0 %542 }
 0x199   : > { %v548_v5 = vpop.permute.xlu1 %547 }
 0x260   : > { %v629_v61 = vpop.f32.mrb[0].mxu0  ;;  %v641_v62 = vpop.f32.mrb[0].mxu1 }
 0x261   : > { %v630_v63 = vadd.f32 %v629_v61, %v533_v58  ;;  %v642_v0 = vadd.f32 %v641_v62, %v543_v60  ;;  %v631_v1 = vpop.f32.mrb[1].mxu0  ;;  %v643_v2 = vpop.f32.mrb[1].mxu1 }
 0x262   : > { %v632_v3 = vadd.f32 %v631_v1, %v533_v58  ;;  %v644_v4 = vadd.f32 %v643_v2, %v543_v60 }
 0x263   : > { %652 = vst [vmem:[%s1266_s24] sm:$0xff] %v630_v63  ;;  %656 = vst [vmem:[%s1266_s24 + $0x20] sm:$0xff] %v642_v0  ;;  %v681_v6 = vmul.f32 %v630_v63, %v630_v63  ;;  %v685_v7 = vmul.f32 %v642_v0, %v642_v0 }
 0x264   : > { %653 = vst [vmem:[%s1266_s24 + $0x8] sm:$0xff] %v632_v3  ;;  %657 = vst [vmem:[%s1266_s24 + $0x28] sm:$0xff] %v644_v4  ;;  %v635_v8 = vpop.f32.mrb[2].mxu0  ;;  %v647_v9 = vpop.f32.mrb[2].mxu1  ;;  %v661_v10 = vadd.f32 %v632_v3, %v630_v63  ;;  %v682_v11 = vmul.f32 %v632_v3, %v632_v3  ;;  %v667_v12 = vadd.f32 %v644_v4, %v642_v0 }
 0x265   : > { %v686_v13 = vmul.f32 %v644_v4, %v644_v4  ;;  %v636_v14 = vadd.f32 %v635_v8, %v538_v59  ;;  %v648_v15 = vadd.f32 %v647_v9, %v548_v5  ;;  %v637_v16 = vpop.f32.mrb[3].mxu0  ;;  %v649_v17 = vpop.f32.mrb[3].mxu1 }
 0x266   : > { %v638_v18 = vadd.f32 %v637_v16, %v538_v59  ;;  %v650_v19 = vadd.f32 %v649_v17, %v548_v5  ;;  %662 = vadd.xlane.f32.xlu0 %v661_v10  ;;  %v689_v20 = vadd.f32 %v682_v11, %v681_v6 }
 0x267   : > { %v695_v22 = vadd.f32 %v686_v13, %v685_v7  ;;  %654 = vst [vmem:[%s1266_s24 + $0x10] sm:$0xff] %v636_v14  ;;  %658 = vst [vmem:[%s1266_s24 + $0x30] sm:$0xff] %v648_v15  ;;  %v683_v23 = vmul.f32 %v636_v14, %v636_v14  ;;  %v687_v24 = vmul.f32 %v648_v15, %v648_v15 }
 0x268   : > { %655 = vst [vmem:[%s1266_s24 + $0x18] sm:$0xff] %v638_v18  ;;  %659 = vst [vmem:[%s1266_s24 + $0x38] sm:$0xff] %v650_v19  ;;  %690 = vadd.xlane.f32.xlu1 %v689_v20  ;;  %v664_v25 = vadd.f32 %v638_v18, %v636_v14  ;;  %v670_v26 = vadd.f32 %v650_v19, %v648_v15  ;;  %v684_v27 = vmul.f32 %v638_v18, %v638_v18 }
 0x269   : > { %v688_v28 = vmul.f32 %v650_v19, %v650_v19 }
 0x26a   : > { %668 = vadd.xlane.f32.xlu0 %v667_v12  ;;  %v692_v29 = vadd.f32 %v684_v27, %v683_v23 }
 0x26b   : > { %v698_v30 = vadd.f32 %v688_v28, %v687_v24 }
 0x26c   : > { %665 = vadd.xlane.f32.xlu1 %v664_v25 }
 0x26e   : > { %671 = vadd.xlane.f32.xlu0 %v670_v26 }
 0x270   : > { %696 = vadd.xlane.f32.xlu1 %v695_v22 }
 0x272   : > { %693 = vadd.xlane.f32.xlu0 %v692_v29 }
 0x276   : > { %699 = vadd.xlane.f32.xlu0 %v698_v30 }
 0x2f3   : > { %v663_v31 = vpop.xlane.xlu0 %662 }
 0x2f4   : > { %v673_v32 = vsel %vm660_vm6, %v663_v31, 0.0 }
 0x2f5   : > { %677 = vst [vmem:[%s1280_s26] sm:$0xff] %v673_v32  ;;  %v691_v33 = vpop.xlane.xlu1 %690 }
 0x2f6   : > { %v701_v34 = vsel %vm660_vm6, %v691_v33, 0.0 }
 0x2f7   : > { %705 = vst [vmem:[%s1285_s10] sm:$0xff] %v701_v34  ;;  %v669_v35 = vpop.xlane.xlu0 %668 }
 0x2f8   : > { %v675_v36 = vsel %vm660_vm6, %v669_v35, 0.0 }
 0x2f9   : > { %679 = vst [vmem:[%s1280_s26 + $0x10] sm:$0xff] %v675_v36  ;;  %v666_v37 = vpop.xlane.xlu1 %665 }
 0x2fa   : > { %v674_v38 = vsel %vm660_vm6, %v666_v37, 0.0 }
 0x2fb   : > { %678 = vst [vmem:[%s1280_s26 + $0x8] sm:$0xff] %v674_v38  ;;  %v672_v39 = vpop.xlane.xlu0 %671 }
 0x2fc   : > { %v676_v40 = vsel %vm660_vm6, %v672_v39, 0.0  ;;  %v769_v47 = vld [vmem:[%s1280_s26] sm:$0xff] (%p1189_p3) }
 0x2fd   : > { %680 = vst [vmem:[%s1280_s26 + $0x18] sm:$0xff] %v676_v40  ;;  %v697_v41 = vpop.xlane.xlu1 %696  ;;  %770 = vst [vmem:[%s735_s16] sm:$0xff] (%p1189_p3), %v769_v47 }
 0x2fe   : > { %v703_v42 = vsel %vm660_vm6, %v697_v41, 0.0 }
 0x2ff   : > { %707 = vst [vmem:[%s1285_s10 + $0x10] sm:$0xff] %v703_v42  ;;  %v694_v43 = vpop.xlane.xlu0 %693  ;;  %732 = sbr.rel (!%p1189_p3) target bundleno = 774 (0x306), region = 52 }
 0x300   : > { %v702_v44 = vsel %vm660_vm6, %v694_v43, 0.0  ;;  %v773_v49 = vld [vmem:[%s1280_s26 + $0x10] sm:$0xff] (%p1189_p3) }
 0x301   : > { %706 = vst [vmem:[%s1285_s10 + $0x8] sm:$0xff] %v702_v44  ;;  %774 = vst [vmem:[%s735_s16 + $0x20] sm:$0xff] (%p1189_p3), %v773_v49 }
 0x302   : > { %v771_v48 = vld [vmem:[%s1280_s26 + $0x8] sm:$0xff] (%p1189_p3) }
 0x303   : > { %v700_v45 = vpop.xlane.xlu0 %699  ;;  %772 = vst [vmem:[%s735_s16 + $0x10] sm:$0xff] (%p1189_p3), %v771_v48 }
 0x304   : > { %v704_v46 = vsel %vm660_vm6, %v700_v45, 0.0  ;;  %v775_v50 = vld [vmem:[%s1280_s26 + $0x18] sm:$0xff] (%p1189_p3) }
 0x305   : > { %708 = vst [vmem:[%s1285_s10 + $0x18] sm:$0xff] %v704_v46  ;;  %776 = vst [vmem:[%s735_s16 + $0x30] sm:$0xff] (%p1189_p3), %v775_v50 }
 0x306 PF: > { %782 = sbr.rel (!%p1189_p3) target bundleno = 782 (0x30e), region = 90  ;;  %s1002_s17 = sshll.u32 (%p1189_p3), %s1098_s29, 3  ;;  %v819_v21 = vld [vmem:[%s1285_s10] sm:$0xff] (%p1189_p3)  ;;  %v823_v52 = vld [vmem:[%s1285_s10 + $0x10] sm:$0xff] (%p1189_p3) }
 0x307   : > { %s785_s20 = scalar_lea.vmem (%p1189_p3), %s1349_s8, %s1002_s17 }
 0x308   : > { %v821_v51 = vld [vmem:[%s1285_s10 + $0x8] sm:$0xff] (%p1189_p3)  ;;  %820 = vst [vmem:[%s785_s20] sm:$0xff] (%p1189_p3), %v819_v21  ;;  %824 = vst [vmem:[%s785_s20 + $0x20] sm:$0xff] (%p1189_p3), %v823_v52 }
 0x309   : > { %822 = vst [vmem:[%s785_s20 + $0x10] sm:$0xff] (%p1189_p3), %v821_v51 }
 0x30c   : > { %v825_v53 = vld [vmem:[%s1285_s10 + $0x18] sm:$0xff] (%p1189_p3) }
 0x30d   : > { %826 = vst [vmem:[%s785_s20 + $0x30] sm:$0xff] %v825_v53 }
 0x30e PF: > { %s19_s9 = sadd.s32 1, %s1106_s9   ;;  %s1351_s27 = smov %s1094_s28 }
 0x30f   : > { %p16_p9 = scmp.ge.s32.totalorder %s19_s9, 4   ;;  %s1352_s28 = smov %s1198_s15 }
 0x310   : > { %s1353_s29 = smov %s1102_s30  ;;  %s1354_s30 = smov %s1356_s11 }
 0x311   :  { %18 = sbr.rel (!%p16_p9) target bundleno = 3 (0x3), region = 177 }

</bundles_post_ra>
